<compile_context>
chip_gen: v7x
topology: tpu7x:2x2x1
jax: 0.10.0
libtpu: 0.0.40
codegen_flags: <defaults>
</compile_context>

<pallas_src>
import functools

import jax
import jax.numpy as jnp
from jax.experimental import pallas as pl
from jax.experimental.pallas import tpu as pltpu

HP = 32        # per-gate padded hidden width (4*HP = 128 lanes)
OUT_PAD = 128  # padded FC output width (lane-dense final store)


# ----------------------------------------------------------------------------
# Fused Pallas kernel: 3 LSTM layers + FC head in one invocation
# ----------------------------------------------------------------------------
def _fused_lstm_kernel(x_ref,
                       wih0_ref, whh0_ref, b0_ref,
                       wih1_ref, whh1_ref, b1_ref,
                       wih2_ref, whh2_ref, b2_ref,
                       fcw_ref, fcb_ref,
                       out_ref, act_ref,
                       *, hp, seq_len, batch):
    """Whole forward pass.

    x_ref   : (T*B, D)     time-major-flattened input (row = t*B + b)
    w*_ref  : padded weights; gate lanes = 4*hp = 128, gate order [i, f, g, o]
    fcw_ref : (hp, OUT_PAD), fcb_ref: (1, OUT_PAD)
    out_ref : (B, OUT_PAD) padded FC output (lane-dense store)
    act_ref : (T*B, hp)    VMEM scratch holding one layer's output sequence
    """
    T, B = seq_len, batch

    def run_layer(seq_in, wih_ref, whh_ref, b_ref, store_seq):
        # Hoisted input projection + bias for the whole sequence: (T*B, 4*hp).
        gx = (jnp.dot(seq_in, wih_ref[...], preferred_element_type=jnp.float32)
              + b_ref[...])
        whh = whh_ref[...]
        h = jnp.zeros((B, hp), jnp.float32)
        c = jnp.zeros((B, hp), jnp.float32)
        for t in range(T):                       # fully unrolled recurrence
            gates = gx[t * B:(t + 1) * B, :] + jnp.dot(
                h, whh, preferred_element_type=jnp.float32)     # (B, 4*hp)
            i_g = jax.nn.sigmoid(gates[:, 0 * hp:1 * hp])
            f_g = jax.nn.sigmoid(gates[:, 1 * hp:2 * hp])
            g_g = jnp.tanh(gates[:, 2 * hp:3 * hp])
            o_g = jax.nn.sigmoid(gates[:, 3 * hp:4 * hp])
            c = f_g * c + i_g * g_g
            h = o_g * jnp.tanh(c)
            if store_seq:
                act_ref[pl.ds(t * B, B), :] = h
        return h

    # Layer 1 consumes the HBM input slab; layers 2/3 consume VMEM scratch.
    run_layer(x_ref[...], wih0_ref, whh0_ref, b0_ref, store_seq=True)
    seq1 = act_ref[...]
    run_layer(seq1, wih1_ref, whh1_ref, b1_ref, store_seq=True)
    seq2 = act_ref[...]
    h_last = run_layer(seq2, wih2_ref, whh2_ref, b2_ref, store_seq=False)

    # TODO(synk): nn.Dropout(p) is identity in eval mode; training-mode random
    # masking is not reproduced here.
    out_ref[...] = (jnp.dot(h_last, fcw_ref[...],
                            preferred_element_type=jnp.float32)
                    + fcb_ref[...])


# ----------------------------------------------------------------------------
# Wrapper
# ----------------------------------------------------------------------------
def _full_block(arr):
    zeros = (0,) * arr.ndim
    return pl.BlockSpec(arr.shape, lambda *_: zeros)


def lstm_model_forward(x, params):
    """Equivalent of LSTM.forward(x) in eval mode. x: (B, T, D) float32."""
    B, T, D = x.shape
    hp = params["hp"]

    # Tiny layout plumbing (512 B): time-major flatten so the kernel's hoisted
    # projections and per-step slices are plain static sublane slices.
    x_tm = jnp.transpose(x, (1, 0, 2)).reshape(T * B, D)

    (w0, u0, b0), (w1, u1, b1), (w2, u2, b2) = params["lstm_layers"]
    inputs = (x_tm, w0, u0, b0, w1, u1, b1, w2, u2, b2,
              params["fc_w"], params["fc_b"])

    kernel = functools.partial(_fused_lstm_kernel, hp=hp, seq_len=T, batch=B)
    out_padded = pl.pallas_call(
        kernel,
        out_shape=jax.ShapeDtypeStruct((B, OUT_PAD), jnp.float32),
        grid_spec=pltpu.PrefetchScalarGridSpec(
            num_scalar_prefetch=0,
            grid=(1,),                         # single invocation, no pipeline
            in_specs=[_full_block(a) for a in inputs],
            out_specs=pl.BlockSpec((B, OUT_PAD), lambda *_: (0, 0)),
            scratch_shapes=[pltpu.VMEM((T * B, hp), jnp.float32)],
        ),
        compiler_params=pltpu.CompilerParams(
            dimension_semantics=("arbitrary",)),
    )(*inputs)
    return out_padded[:, :params["output_dim"]]


# ----------------------------------------------------------------------------
# Parameters (PyTorch-style uniform(-1/sqrt(H), +1/sqrt(H))) + gate padding
# ----------------------------------------------------------------------------
def _pad_gate_cols(w, H, hp):
    """(rows, 4H) -> (rows, 4*hp): each gate column-block zero-padded H->hp."""
    rows = w.shape[0]
    out = jnp.zeros((rows, 4 * hp), jnp.float32)
    for k in range(4):
        out = out.at[:, k * hp:k * hp + H].set(w[:, k * H:(k + 1) * H])
    return out


def make_params(key, input_dim, hidden_dim, output_dim):
    H, hp = hidden_dim, HP
    assert hp >= H
    bound = 1.0 / float(hidden_dim) ** 0.5
    raw_layers, padded_layers = [], []
    in_dim = input_dim
    for layer in range(3):
        key, k1, k2, k3, k4 = jax.random.split(key, 5)
        # stored transposed for x @ W
        w_ih = jax.random.uniform(k1, (in_dim, 4 * H), jnp.float32, -bound, bound)
        w_hh = jax.random.uniform(k2, (H, 4 * H), jnp.float32, -bound, bound)
        b_ih = jax.random.uniform(k3, (4 * H,), jnp.float32, -bound, bound)
        b_hh = jax.random.uniform(k4, (4 * H,), jnp.float32, -bound, bound)
        b = (b_ih + b_hh).reshape(1, 4 * H)
        raw_layers.append((w_ih, w_hh, b))

        w_ih_p = _pad_gate_cols(w_ih, H, hp)
        if layer > 0:            # layers 2/3: pad input rows H -> hp (zeros)
            w_ih_p = jnp.pad(w_ih_p, ((0, hp - H), (0, 0)))
        w_hh_p = jnp.pad(_pad_gate_cols(w_hh, H, hp), ((0, hp - H), (0, 0)))
        b_p = _pad_gate_cols(b, H, hp)
        padded_layers.append((w_ih_p, w_hh_p, b_p))
        in_dim = H

    key, k5, k6 = jax.random.split(key, 3)
    fc_w = jax.random.uniform(k5, (H, output_dim), jnp.float32, -bound, bound)
    fc_b = jax.random.uniform(k6, (output_dim,), jnp.float32, -bound, bound)
    fc_w_p = jnp.zeros((hp, OUT_PAD), jnp.float32).at[:H, :output_dim].set(fc_w)
    fc_b_p = jnp.zeros((1, OUT_PAD), jnp.float32).at[0, :output_dim].set(fc_b)

    return {"lstm_layers": padded_layers, "fc_w": fc_w_p, "fc_b": fc_b_p,
            "raw_layers": raw_layers, "raw_fc": (fc_w, fc_b),
            "hp": hp, "hidden_dim": H, "output_dim": output_dim}


# ----------------------------------------------------------------------------
# Pure-JAX reference (eval-mode torch semantics) for a correctness check
# ----------------------------------------------------------------------------
def lstm_reference(x, params):
    HI = jax.lax.Precision.HIGHEST
    H = params["hidden_dim"]
    seq = x
    for (w_ih, w_hh, b) in params["raw_layers"]:
        B, T, _ = seq.shape
        h = jnp.zeros((B, H), jnp.float32)
        c = jnp.zeros((B, H), jnp.float32)
        outs = []
        for t in range(T):
            gates = (jnp.dot(seq[:, t, :], w_ih, precision=HI)
                     + jnp.dot(h, w_hh, precision=HI) + b)
            i_g = jax.nn.sigmoid(gates[:, 0 * H:1 * H])
            f_g = jax.nn.sigmoid(gates[:, 1 * H:2 * H])
            g_g = jnp.tanh(gates[:, 2 * H:3 * H])
            o_g = jax.nn.sigmoid(gates[:, 3 * H:4 * H])
            c = f_g * c + i_g * g_g
            h = o_g * jnp.tanh(c)
            outs.append(h)
        seq = jnp.stack(outs, axis=1)
    fc_w, fc_b = params["raw_fc"]
    return jnp.dot(seq[:, -1, :], fc_w, precision=HI) + fc_b


# ----------------------------------------------------------------------------
if __name__ == "__main__":
    batch = 2
    seq_len = 8
    input_dim = 8          # "8 indicators"
    hidden_dim = 30
    output_dim = 1

    key = jax.random.PRNGKey(0)
    key, kx = jax.random.split(key)
    x = jax.random.normal(kx, (batch, seq_len, input_dim), jnp.float32)

    params = make_params(key, input_dim, hidden_dim, output_dim)

    out = jax.block_until_ready(lstm_model_forward(x, params))
    assert out.shape == (batch, output_dim), out.shape

    ref = jax.block_until_ready(lstm_reference(x, params))
    assert jnp.allclose(out, ref, atol=1e-3, rtol=1e-3), (out, ref)

    print("KERNEL_OK")
</pallas_src>

<mosaic_0001>
module attributes {stable_mosaic.version = 11 : i64} {
  func.func @_fused_lstm_kernel(%arg0: i32, %arg1: memref<16x8xf32, #tpu.memory_space<vmem>>, %arg2: memref<8x128xf32, #tpu.memory_space<vmem>>, %arg3: memref<32x128xf32, #tpu.memory_space<vmem>>, %arg4: memref<1x128xf32, #tpu.memory_space<vmem>>, %arg5: memref<32x128xf32, #tpu.memory_space<vmem>>, %arg6: memref<32x128xf32, #tpu.memory_space<vmem>>, %arg7: memref<1x128xf32, #tpu.memory_space<vmem>>, %arg8: memref<32x128xf32, #tpu.memory_space<vmem>>, %arg9: memref<32x128xf32, #tpu.memory_space<vmem>>, %arg10: memref<1x128xf32, #tpu.memory_space<vmem>>, %arg11: memref<32x128xf32, #tpu.memory_space<vmem>>, %arg12: memref<1x128xf32, #tpu.memory_space<vmem>>, %arg13: memref<2x128xf32, #tpu.memory_space<vmem>>, %arg14: memref<16x32xf32, #tpu.memory_space<vmem>>) attributes {dimension_semantics = [#tpu.dimension_semantics<arbitrary>], iteration_bounds = array<i64: 1>, scalar_prefetch = 0 : i64, scratch_operands = 1 : i64, tpu.core_type = #tpu.core_type<tc>, window_params = [{pipeline_mode = #tpu.pipeline_mode<synchronous>, transform_indices = @transform_0, window_bounds = array<i64: 16, 8>}, {pipeline_mode = #tpu.pipeline_mode<synchronous>, transform_indices = @transform_1, window_bounds = array<i64: 8, 128>}, {pipeline_mode = #tpu.pipeline_mode<synchronous>, transform_indices = @transform_2, window_bounds = array<i64: 32, 128>}, {pipeline_mode = #tpu.pipeline_mode<synchronous>, transform_indices = @transform_3, window_bounds = array<i64: 1, 128>}, {pipeline_mode = #tpu.pipeline_mode<synchronous>, transform_indices = @transform_4, window_bounds = array<i64: 32, 128>}, {pipeline_mode = #tpu.pipeline_mode<synchronous>, transform_indices = @transform_5, window_bounds = array<i64: 32, 128>}, {pipeline_mode = #tpu.pipeline_mode<synchronous>, transform_indices = @transform_6, window_bounds = array<i64: 1, 128>}, {pipeline_mode = #tpu.pipeline_mode<synchronous>, transform_indices = @transform_7, window_bounds = array<i64: 32, 128>}, {pipeline_mode = #tpu.pipeline_mode<synchronous>, transform_indices = @transform_8, window_bounds = array<i64: 32, 128>}, {pipeline_mode = #tpu.pipeline_mode<synchronous>, transform_indices = @transform_9, window_bounds = array<i64: 1, 128>}, {pipeline_mode = #tpu.pipeline_mode<synchronous>, transform_indices = @transform_10, window_bounds = array<i64: 32, 128>}, {pipeline_mode = #tpu.pipeline_mode<synchronous>, transform_indices = @transform_11, window_bounds = array<i64: 1, 128>}, {pipeline_mode = #tpu.pipeline_mode<synchronous>, transform_indices = @transform_12, window_bounds = array<i64: 2, 128>}]} {
    %c0 = arith.constant 0 : index
    %c0_0 = arith.constant 0 : index
    %0 = vector.load %arg1[%c0, %c0_0] : memref<16x8xf32, #tpu.memory_space<vmem>>, vector<16x8xf32>
    %c0_1 = arith.constant 0 : index
    %c0_2 = arith.constant 0 : index
    %1 = vector.load %arg2[%c0_1, %c0_2] : memref<8x128xf32, #tpu.memory_space<vmem>>, vector<8x128xf32>
    %cst = arith.constant dense<0.000000e+00> : vector<16x128xf32>
    %2 = tpu.matmul %0, %1, %cst {dimension_numbers = #tpu.dot_dimension_numbers<[1], [0], [0], [1], [0, 0, 1, 1], [], []>} : vector<16x8xf32>, vector<8x128xf32>, vector<16x128xf32> -> vector<16x128xf32>
    %c0_3 = arith.constant 0 : index
    %c0_4 = arith.constant 0 : index
    %3 = vector.load %arg4[%c0_3, %c0_4] : memref<1x128xf32, #tpu.memory_space<vmem>>, vector<1x128xf32>
    %4 = vector.broadcast %3 : vector<1x128xf32> to vector<16x128xf32>
    %5 = arith.addf %2, %4 : vector<16x128xf32>
    %c0_5 = arith.constant 0 : index
    %c0_6 = arith.constant 0 : index
    %6 = vector.load %arg3[%c0_5, %c0_6] : memref<32x128xf32, #tpu.memory_space<vmem>>, vector<32x128xf32>
    %cst_7 = arith.constant 0.000000e+00 : f32
    %7 = vector.broadcast %cst_7 : f32 to vector<2x32xf32>
    %cst_8 = arith.constant 0.000000e+00 : f32
    %8 = vector.broadcast %cst_8 : f32 to vector<2x32xf32>
    %9 = vector.extract_strided_slice %5 {offsets = [0, 0], sizes = [2, 128], strides = [1, 1]} : vector<16x128xf32> to vector<2x128xf32>
    %cst_9 = arith.constant dense<0.000000e+00> : vector<2x128xf32>
    %10 = tpu.matmul %7, %6, %cst_9 {dimension_numbers = #tpu.dot_dimension_numbers<[1], [0], [0], [1], [0, 0, 1, 1], [], []>} : vector<2x32xf32>, vector<32x128xf32>, vector<2x128xf32> -> vector<2x128xf32>
    %11 = arith.addf %9, %10 : vector<2x128xf32>
    %12 = vector.extract_strided_slice %11 {offsets = [0, 0], sizes = [2, 32], strides = [1, 1]} : vector<2x128xf32> to vector<2x32xf32>
    %13 = arith.negf %12 : vector<2x32xf32>
    %14 = math.exp %13 : vector<2x32xf32>
    %cst_10 = arith.constant 1.000000e+00 : f32
    %15 = vector.broadcast %cst_10 : f32 to vector<2x32xf32>
    %16 = arith.addf %15, %14 : vector<2x32xf32>
    %17 = arith.divf %15, %16 : vector<2x32xf32>
    %18 = vector.extract_strided_slice %11 {offsets = [0, 32], sizes = [2, 32], strides = [1, 1]} : vector<2x128xf32> to vector<2x32xf32>
    %19 = arith.negf %18 : vector<2x32xf32>
    %20 = math.exp %19 : vector<2x32xf32>
    %cst_11 = arith.constant 1.000000e+00 : f32
    %21 = vector.broadcast %cst_11 : f32 to vector<2x32xf32>
    %22 = arith.addf %21, %20 : vector<2x32xf32>
    %23 = arith.divf %21, %22 : vector<2x32xf32>
    %24 = vector.extract_strided_slice %11 {offsets = [0, 64], sizes = [2, 32], strides = [1, 1]} : vector<2x128xf32> to vector<2x32xf32>
    %25 = math.tanh %24 : vector<2x32xf32>
    %26 = vector.extract_strided_slice %11 {offsets = [0, 96], sizes = [2, 32], strides = [1, 1]} : vector<2x128xf32> to vector<2x32xf32>
    %27 = arith.negf %26 : vector<2x32xf32>
    %28 = math.exp %27 : vector<2x32xf32>
    %cst_12 = arith.constant 1.000000e+00 : f32
    %29 = vector.broadcast %cst_12 : f32 to vector<2x32xf32>
    %30 = arith.addf %29, %28 : vector<2x32xf32>
    %31 = arith.divf %29, %30 : vector<2x32xf32>
    %32 = arith.mulf %23, %8 : vector<2x32xf32>
    %33 = arith.mulf %17, %25 : vector<2x32xf32>
    %34 = arith.addf %32, %33 : vector<2x32xf32>
    %35 = math.tanh %34 : vector<2x32xf32>
    %36 = arith.mulf %31, %35 : vector<2x32xf32>
    %c0_13 = arith.constant 0 : index
    %c0_14 = arith.constant 0 : index
    %37 = vector.load %arg14[%c0_13, %c0_14] : memref<16x32xf32, #tpu.memory_space<vmem>>, vector<2x32xf32>
    tpu.vector_store %arg14[%c0_13, %c0_14], %36 {strides = array<i32>} : memref<16x32xf32, #tpu.memory_space<vmem>>, vector<2x32xf32>,
    %38 = vector.extract_strided_slice %5 {offsets = [2, 0], sizes = [2, 128], strides = [1, 1]} : vector<16x128xf32> to vector<2x128xf32>
    %cst_15 = arith.constant dense<0.000000e+00> : vector<2x128xf32>
    %39 = tpu.matmul %36, %6, %cst_15 {dimension_numbers = #tpu.dot_dimension_numbers<[1], [0], [0], [1], [0, 0, 1, 1], [], []>} : vector<2x32xf32>, vector<32x128xf32>, vector<2x128xf32> -> vector<2x128xf32>
    %40 = arith.addf %38, %39 : vector<2x128xf32>
    %41 = vector.extract_strided_slice %40 {offsets = [0, 0], sizes = [2, 32], strides = [1, 1]} : vector<2x128xf32> to vector<2x32xf32>
    %42 = arith.negf %41 : vector<2x32xf32>
    %43 = math.exp %42 : vector<2x32xf32>
    %cst_16 = arith.constant 1.000000e+00 : f32
    %44 = vector.broadcast %cst_16 : f32 to vector<2x32xf32>
    %45 = arith.addf %44, %43 : vector<2x32xf32>
    %46 = arith.divf %44, %45 : vector<2x32xf32>
    %47 = vector.extract_strided_slice %40 {offsets = [0, 32], sizes = [2, 32], strides = [1, 1]} : vector<2x128xf32> to vector<2x32xf32>
    %48 = arith.negf %47 : vector<2x32xf32>
    %49 = math.exp %48 : vector<2x32xf32>
    %cst_17 = arith.constant 1.000000e+00 : f32
    %50 = vector.broadcast %cst_17 : f32 to vector<2x32xf32>
    %51 = arith.addf %50, %49 : vector<2x32xf32>
    %52 = arith.divf %50, %51 : vector<2x32xf32>
    %53 = vector.extract_strided_slice %40 {offsets = [0, 64], sizes = [2, 32], strides = [1, 1]} : vector<2x128xf32> to vector<2x32xf32>
    %54 = math.tanh %53 : vector<2x32xf32>
    %55 = vector.extract_strided_slice %40 {offsets = [0, 96], sizes = [2, 32], strides = [1, 1]} : vector<2x128xf32> to vector<2x32xf32>
    %56 = arith.negf %55 : vector<2x32xf32>
    %57 = math.exp %56 : vector<2x32xf32>
    %cst_18 = arith.constant 1.000000e+00 : f32
    %58 = vector.broadcast %cst_18 : f32 to vector<2x32xf32>
    %59 = arith.addf %58, %57 : vector<2x32xf32>
    %60 = arith.divf %58, %59 : vector<2x32xf32>
    %61 = arith.mulf %52, %34 : vector<2x32xf32>
    %62 = arith.mulf %46, %54 : vector<2x32xf32>
    %63 = arith.addf %61, %62 : vector<2x32xf32>
    %64 = math.tanh %63 : vector<2x32xf32>
    %65 = arith.mulf %60, %64 : vector<2x32xf32>
    %c2 = arith.constant 2 : index
    %c0_19 = arith.constant 0 : index
    %66 = vector.load %arg14[%c2, %c0_19] : memref<16x32xf32, #tpu.memory_space<vmem>>, vector<2x32xf32>
    tpu.vector_store %arg14[%c2, %c0_19], %65 {strides = array<i32>} : memref<16x32xf32, #tpu.memory_space<vmem>>, vector<2x32xf32>,
    %67 = vector.extract_strided_slice %5 {offsets = [4, 0], sizes = [2, 128], strides = [1, 1]} : vector<16x128xf32> to vector<2x128xf32>
    %cst_20 = arith.constant dense<0.000000e+00> : vector<2x128xf32>
    %68 = tpu.matmul %65, %6, %cst_20 {dimension_numbers = #tpu.dot_dimension_numbers<[1], [0], [0], [1], [0, 0, 1, 1], [], []>} : vector<2x32xf32>, vector<32x128xf32>, vector<2x128xf32> -> vector<2x128xf32>
    %69 = arith.addf %67, %68 : vector<2x128xf32>
    %70 = vector.extract_strided_slice %69 {offsets = [0, 0], sizes = [2, 32], strides = [1, 1]} : vector<2x128xf32> to vector<2x32xf32>
    %71 = arith.negf %70 : vector<2x32xf32>
    %72 = math.exp %71 : vector<2x32xf32>
    %cst_21 = arith.constant 1.000000e+00 : f32
    %73 = vector.broadcast %cst_21 : f32 to vector<2x32xf32>
    %74 = arith.addf %73, %72 : vector<2x32xf32>
    %75 = arith.divf %73, %74 : vector<2x32xf32>
    %76 = vector.extract_strided_slice %69 {offsets = [0, 32], sizes = [2, 32], strides = [1, 1]} : vector<2x128xf32> to vector<2x32xf32>
    %77 = arith.negf %76 : vector<2x32xf32>
    %78 = math.exp %77 : vector<2x32xf32>
    %cst_22 = arith.constant 1.000000e+00 : f32
    %79 = vector.broadcast %cst_22 : f32 to vector<2x32xf32>
    %80 = arith.addf %79, %78 : vector<2x32xf32>
    %81 = arith.divf %79, %80 : vector<2x32xf32>
    %82 = vector.extract_strided_slice %69 {offsets = [0, 64], sizes = [2, 32], strides = [1, 1]} : vector<2x128xf32> to vector<2x32xf32>
    %83 = math.tanh %82 : vector<2x32xf32>
    %84 = vector.extract_strided_slice %69 {offsets = [0, 96], sizes = [2, 32], strides = [1, 1]} : vector<2x128xf32> to vector<2x32xf32>
    %85 = arith.negf %84 : vector<2x32xf32>
    %86 = math.exp %85 : vector<2x32xf32>
    %cst_23 = arith.constant 1.000000e+00 : f32
    %87 = vector.broadcast %cst_23 : f32 to vector<2x32xf32>
    %88 = arith.addf %87, %86 : vector<2x32xf32>
    %89 = arith.divf %87, %88 : vector<2x32xf32>
    %90 = arith.mulf %81, %63 : vector<2x32xf32>
    %91 = arith.mulf %75, %83 : vector<2x32xf32>
    %92 = arith.addf %90, %91 : vector<2x32xf32>
    %93 = math.tanh %92 : vector<2x32xf32>
    %94 = arith.mulf %89, %93 : vector<2x32xf32>
    %c4 = arith.constant 4 : index
    %c0_24 = arith.constant 0 : index
    %95 = vector.load %arg14[%c4, %c0_24] : memref<16x32xf32, #tpu.memory_space<vmem>>, vector<2x32xf32>
    tpu.vector_store %arg14[%c4, %c0_24], %94 {strides = array<i32>} : memref<16x32xf32, #tpu.memory_space<vmem>>, vector<2x32xf32>,
    %96 = vector.extract_strided_slice %5 {offsets = [6, 0], sizes = [2, 128], strides = [1, 1]} : vector<16x128xf32> to vector<2x128xf32>
    %cst_25 = arith.constant dense<0.000000e+00> : vector<2x128xf32>
    %97 = tpu.matmul %94, %6, %cst_25 {dimension_numbers = #tpu.dot_dimension_numbers<[1], [0], [0], [1], [0, 0, 1, 1], [], []>} : vector<2x32xf32>, vector<32x128xf32>, vector<2x128xf32> -> vector<2x128xf32>
    %98 = arith.addf %96, %97 : vector<2x128xf32>
    %99 = vector.extract_strided_slice %98 {offsets = [0, 0], sizes = [2, 32], strides = [1, 1]} : vector<2x128xf32> to vector<2x32xf32>
    %100 = arith.negf %99 : vector<2x32xf32>
    %101 = math.exp %100 : vector<2x32xf32>
    %cst_26 = arith.constant 1.000000e+00 : f32
    %102 = vector.broadcast %cst_26 : f32 to vector<2x32xf32>
    %103 = arith.addf %102, %101 : vector<2x32xf32>
    %104 = arith.divf %102, %103 : vector<2x32xf32>
    %105 = vector.extract_strided_slice %98 {offsets = [0, 32], sizes = [2, 32], strides = [1, 1]} : vector<2x128xf32> to vector<2x32xf32>
    %106 = arith.negf %105 : vector<2x32xf32>
    %107 = math.exp %106 : vector<2x32xf32>
    %cst_27 = arith.constant 1.000000e+00 : f32
    %108 = vector.broadcast %cst_27 : f32 to vector<2x32xf32>
    %109 = arith.addf %108, %107 : vector<2x32xf32>
    %110 = arith.divf %108, %109 : vector<2x32xf32>
    %111 = vector.extract_strided_slice %98 {offsets = [0, 64], sizes = [2, 32], strides = [1, 1]} : vector<2x128xf32> to vector<2x32xf32>
    %112 = math.tanh %111 : vector<2x32xf32>
    %113 = vector.extract_strided_slice %98 {offsets = [0, 96], sizes = [2, 32], strides = [1, 1]} : vector<2x128xf32> to vector<2x32xf32>
    %114 = arith.negf %113 : vector<2x32xf32>
    %115 = math.exp %114 : vector<2x32xf32>
    %cst_28 = arith.constant 1.000000e+00 : f32
    %116 = vector.broadcast %cst_28 : f32 to vector<2x32xf32>
    %117 = arith.addf %116, %115 : vector<2x32xf32>
    %118 = arith.divf %116, %117 : vector<2x32xf32>
    %119 = arith.mulf %110, %92 : vector<2x32xf32>
    %120 = arith.mulf %104, %112 : vector<2x32xf32>
    %121 = arith.addf %119, %120 : vector<2x32xf32>
    %122 = math.tanh %121 : vector<2x32xf32>
    %123 = arith.mulf %118, %122 : vector<2x32xf32>
    %c6 = arith.constant 6 : index
    %c0_29 = arith.constant 0 : index
    %124 = vector.load %arg14[%c6, %c0_29] : memref<16x32xf32, #tpu.memory_space<vmem>>, vector<2x32xf32>
    tpu.vector_store %arg14[%c6, %c0_29], %123 {strides = array<i32>} : memref<16x32xf32, #tpu.memory_space<vmem>>, vector<2x32xf32>,
    %125 = vector.extract_strided_slice %5 {offsets = [8, 0], sizes = [2, 128], strides = [1, 1]} : vector<16x128xf32> to vector<2x128xf32>
    %cst_30 = arith.constant dense<0.000000e+00> : vector<2x128xf32>
    %126 = tpu.matmul %123, %6, %cst_30 {dimension_numbers = #tpu.dot_dimension_numbers<[1], [0], [0], [1], [0, 0, 1, 1], [], []>} : vector<2x32xf32>, vector<32x128xf32>, vector<2x128xf32> -> vector<2x128xf32>
    %127 = arith.addf %125, %126 : vector<2x128xf32>
    %128 = vector.extract_strided_slice %127 {offsets = [0, 0], sizes = [2, 32], strides = [1, 1]} : vector<2x128xf32> to vector<2x32xf32>
    %129 = arith.negf %128 : vector<2x32xf32>
    %130 = math.exp %129 : vector<2x32xf32>
    %cst_31 = arith.constant 1.000000e+00 : f32
    %131 = vector.broadcast %cst_31 : f32 to vector<2x32xf32>
    %132 = arith.addf %131, %130 : vector<2x32xf32>
    %133 = arith.divf %131, %132 : vector<2x32xf32>
    %134 = vector.extract_strided_slice %127 {offsets = [0, 32], sizes = [2, 32], strides = [1, 1]} : vector<2x128xf32> to vector<2x32xf32>
    %135 = arith.negf %134 : vector<2x32xf32>
    %136 = math.exp %135 : vector<2x32xf32>
    %cst_32 = arith.constant 1.000000e+00 : f32
    %137 = vector.broadcast %cst_32 : f32 to vector<2x32xf32>
    %138 = arith.addf %137, %136 : vector<2x32xf32>
    %139 = arith.divf %137, %138 : vector<2x32xf32>
    %140 = vector.extract_strided_slice %127 {offsets = [0, 64], sizes = [2, 32], strides = [1, 1]} : vector<2x128xf32> to vector<2x32xf32>
    %141 = math.tanh %140 : vector<2x32xf32>
    %142 = vector.extract_strided_slice %127 {offsets = [0, 96], sizes = [2, 32], strides = [1, 1]} : vector<2x128xf32> to vector<2x32xf32>
    %143 = arith.negf %142 : vector<2x32xf32>
    %144 = math.exp %143 : vector<2x32xf32>
    %cst_33 = arith.constant 1.000000e+00 : f32
    %145 = vector.broadcast %cst_33 : f32 to vector<2x32xf32>
    %146 = arith.addf %145, %144 : vector<2x32xf32>
    %147 = arith.divf %145, %146 : vector<2x32xf32>
    %148 = arith.mulf %139, %121 : vector<2x32xf32>
    %149 = arith.mulf %133, %141 : vector<2x32xf32>
    %150 = arith.addf %148, %149 : vector<2x32xf32>
    %151 = math.tanh %150 : vector<2x32xf32>
    %152 = arith.mulf %147, %151 : vector<2x32xf32>
    %c8 = arith.constant 8 : index
    %c0_34 = arith.constant 0 : index
    %153 = vector.load %arg14[%c8, %c0_34] : memref<16x32xf32, #tpu.memory_space<vmem>>, vector<2x32xf32>
    tpu.vector_store %arg14[%c8, %c0_34], %152 {strides = array<i32>} : memref<16x32xf32, #tpu.memory_space<vmem>>, vector<2x32xf32>,
    %154 = vector.extract_strided_slice %5 {offsets = [10, 0], sizes = [2, 128], strides = [1, 1]} : vector<16x128xf32> to vector<2x128xf32>
    %cst_35 = arith.constant dense<0.000000e+00> : vector<2x128xf32>
    %155 = tpu.matmul %152, %6, %cst_35 {dimension_numbers = #tpu.dot_dimension_numbers<[1], [0], [0], [1], [0, 0, 1, 1], [], []>} : vector<2x32xf32>, vector<32x128xf32>, vector<2x128xf32> -> vector<2x128xf32>
    %156 = arith.addf %154, %155 : vector<2x128xf32>
    %157 = vector.extract_strided_slice %156 {offsets = [0, 0], sizes = [2, 32], strides = [1, 1]} : vector<2x128xf32> to vector<2x32xf32>
    %158 = arith.negf %157 : vector<2x32xf32>
    %159 = math.exp %158 : vector<2x32xf32>
    %cst_36 = arith.constant 1.000000e+00 : f32
    %160 = vector.broadcast %cst_36 : f32 to vector<2x32xf32>
    %161 = arith.addf %160, %159 : vector<2x32xf32>
    %162 = arith.divf %160, %161 : vector<2x32xf32>
    %163 = vector.extract_strided_slice %156 {offsets = [0, 32], sizes = [2, 32], strides = [1, 1]} : vector<2x128xf32> to vector<2x32xf32>
    %164 = arith.negf %163 : vector<2x32xf32>
    %165 = math.exp %164 : vector<2x32xf32>
    %cst_37 = arith.constant 1.000000e+00 : f32
    %166 = vector.broadcast %cst_37 : f32 to vector<2x32xf32>
    %167 = arith.addf %166, %165 : vector<2x32xf32>
    %168 = arith.divf %166, %167 : vector<2x32xf32>
    %169 = vector.extract_strided_slice %156 {offsets = [0, 64], sizes = [2, 32], strides = [1, 1]} : vector<2x128xf32> to vector<2x32xf32>
    %170 = math.tanh %169 : vector<2x32xf32>
    %171 = vector.extract_strided_slice %156 {offsets = [0, 96], sizes = [2, 32], strides = [1, 1]} : vector<2x128xf32> to vector<2x32xf32>
    %172 = arith.negf %171 : vector<2x32xf32>
    %173 = math.exp %172 : vector<2x32xf32>
    %cst_38 = arith.constant 1.000000e+00 : f32
    %174 = vector.broadcast %cst_38 : f32 to vector<2x32xf32>
    %175 = arith.addf %174, %173 : vector<2x32xf32>
    %176 = arith.divf %174, %175 : vector<2x32xf32>
    %177 = arith.mulf %168, %150 : vector<2x32xf32>
    %178 = arith.mulf %162, %170 : vector<2x32xf32>
    %179 = arith.addf %177, %178 : vector<2x32xf32>
    %180 = math.tanh %179 : vector<2x32xf32>
    %181 = arith.mulf %176, %180 : vector<2x32xf32>
    %c10 = arith.constant 10 : index
    %c0_39 = arith.constant 0 : index
    %182 = vector.load %arg14[%c10, %c0_39] : memref<16x32xf32, #tpu.memory_space<vmem>>, vector<2x32xf32>
    tpu.vector_store %arg14[%c10, %c0_39], %181 {strides = array<i32>} : memref<16x32xf32, #tpu.memory_space<vmem>>, vector<2x32xf32>,
    %183 = vector.extract_strided_slice %5 {offsets = [12, 0], sizes = [2, 128], strides = [1, 1]} : vector<16x128xf32> to vector<2x128xf32>
    %cst_40 = arith.constant dense<0.000000e+00> : vector<2x128xf32>
    %184 = tpu.matmul %181, %6, %cst_40 {dimension_numbers = #tpu.dot_dimension_numbers<[1], [0], [0], [1], [0, 0, 1, 1], [], []>} : vector<2x32xf32>, vector<32x128xf32>, vector<2x128xf32> -> vector<2x128xf32>
    %185 = arith.addf %183, %184 : vector<2x128xf32>
    %186 = vector.extract_strided_slice %185 {offsets = [0, 0], sizes = [2, 32], strides = [1, 1]} : vector<2x128xf32> to vector<2x32xf32>
    %187 = arith.negf %186 : vector<2x32xf32>
    %188 = math.exp %187 : vector<2x32xf32>
    %cst_41 = arith.constant 1.000000e+00 : f32
    %189 = vector.broadcast %cst_41 : f32 to vector<2x32xf32>
    %190 = arith.addf %189, %188 : vector<2x32xf32>
    %191 = arith.divf %189, %190 : vector<2x32xf32>
    %192 = vector.extract_strided_slice %185 {offsets = [0, 32], sizes = [2, 32], strides = [1, 1]} : vector<2x128xf32> to vector<2x32xf32>
    %193 = arith.negf %192 : vector<2x32xf32>
    %194 = math.exp %193 : vector<2x32xf32>
    %cst_42 = arith.constant 1.000000e+00 : f32
    %195 = vector.broadcast %cst_42 : f32 to vector<2x32xf32>
    %196 = arith.addf %195, %194 : vector<2x32xf32>
    %197 = arith.divf %195, %196 : vector<2x32xf32>
    %198 = vector.extract_strided_slice %185 {offsets = [0, 64], sizes = [2, 32], strides = [1, 1]} : vector<2x128xf32> to vector<2x32xf32>
    %199 = math.tanh %198 : vector<2x32xf32>
    %200 = vector.extract_strided_slice %185 {offsets = [0, 96], sizes = [2, 32], strides = [1, 1]} : vector<2x128xf32> to vector<2x32xf32>
    %201 = arith.negf %200 : vector<2x32xf32>
    %202 = math.exp %201 : vector<2x32xf32>
    %cst_43 = arith.constant 1.000000e+00 : f32
    %203 = vector.broadcast %cst_43 : f32 to vector<2x32xf32>
    %204 = arith.addf %203, %202 : vector<2x32xf32>
    %205 = arith.divf %203, %204 : vector<2x32xf32>
    %206 = arith.mulf %197, %179 : vector<2x32xf32>
    %207 = arith.mulf %191, %199 : vector<2x32xf32>
    %208 = arith.addf %206, %207 : vector<2x32xf32>
    %209 = math.tanh %208 : vector<2x32xf32>
    %210 = arith.mulf %205, %209 : vector<2x32xf32>
    %c12 = arith.constant 12 : index
    %c0_44 = arith.constant 0 : index
    %211 = vector.load %arg14[%c12, %c0_44] : memref<16x32xf32, #tpu.memory_space<vmem>>, vector<2x32xf32>
    tpu.vector_store %arg14[%c12, %c0_44], %210 {strides = array<i32>} : memref<16x32xf32, #tpu.memory_space<vmem>>, vector<2x32xf32>,
    %212 = vector.extract_strided_slice %5 {offsets = [14, 0], sizes = [2, 128], strides = [1, 1]} : vector<16x128xf32> to vector<2x128xf32>
    %cst_45 = arith.constant dense<0.000000e+00> : vector<2x128xf32>
    %213 = tpu.matmul %210, %6, %cst_45 {dimension_numbers = #tpu.dot_dimension_numbers<[1], [0], [0], [1], [0, 0, 1, 1], [], []>} : vector<2x32xf32>, vector<32x128xf32>, vector<2x128xf32> -> vector<2x128xf32>
    %214 = arith.addf %212, %213 : vector<2x128xf32>
    %215 = vector.extract_strided_slice %214 {offsets = [0, 0], sizes = [2, 32], strides = [1, 1]} : vector<2x128xf32> to vector<2x32xf32>
    %216 = arith.negf %215 : vector<2x32xf32>
    %217 = math.exp %216 : vector<2x32xf32>
    %cst_46 = arith.constant 1.000000e+00 : f32
    %218 = vector.broadcast %cst_46 : f32 to vector<2x32xf32>
    %219 = arith.addf %218, %217 : vector<2x32xf32>
    %220 = arith.divf %218, %219 : vector<2x32xf32>
    %221 = vector.extract_strided_slice %214 {offsets = [0, 32], sizes = [2, 32], strides = [1, 1]} : vector<2x128xf32> to vector<2x32xf32>
    %222 = arith.negf %221 : vector<2x32xf32>
    %223 = math.exp %222 : vector<2x32xf32>
    %cst_47 = arith.constant 1.000000e+00 : f32
    %224 = vector.broadcast %cst_47 : f32 to vector<2x32xf32>
    %225 = arith.addf %224, %223 : vector<2x32xf32>
    %226 = arith.divf %224, %225 : vector<2x32xf32>
    %227 = vector.extract_strided_slice %214 {offsets = [0, 64], sizes = [2, 32], strides = [1, 1]} : vector<2x128xf32> to vector<2x32xf32>
    %228 = math.tanh %227 : vector<2x32xf32>
    %229 = vector.extract_strided_slice %214 {offsets = [0, 96], sizes = [2, 32], strides = [1, 1]} : vector<2x128xf32> to vector<2x32xf32>
    %230 = arith.negf %229 : vector<2x32xf32>
    %231 = math.exp %230 : vector<2x32xf32>
    %cst_48 = arith.constant 1.000000e+00 : f32
    %232 = vector.broadcast %cst_48 : f32 to vector<2x32xf32>
    %233 = arith.addf %232, %231 : vector<2x32xf32>
    %234 = arith.divf %232, %233 : vector<2x32xf32>
    %235 = arith.mulf %226, %208 : vector<2x32xf32>
    %236 = arith.mulf %220, %228 : vector<2x32xf32>
    %237 = arith.addf %235, %236 : vector<2x32xf32>
    %238 = math.tanh %237 : vector<2x32xf32>
    %239 = arith.mulf %234, %238 : vector<2x32xf32>
    %c14 = arith.constant 14 : index
    %c0_49 = arith.constant 0 : index
    %240 = vector.load %arg14[%c14, %c0_49] : memref<16x32xf32, #tpu.memory_space<vmem>>, vector<2x32xf32>
    tpu.vector_store %arg14[%c14, %c0_49], %239 {strides = array<i32>} : memref<16x32xf32, #tpu.memory_space<vmem>>, vector<2x32xf32>,
    %c0_50 = arith.constant 0 : index
    %c0_51 = arith.constant 0 : index
    %241 = vector.load %arg14[%c0_50, %c0_51] : memref<16x32xf32, #tpu.memory_space<vmem>>, vector<16x32xf32>
    %c0_52 = arith.constant 0 : index
    %c0_53 = arith.constant 0 : index
    %242 = vector.load %arg5[%c0_52, %c0_53] : memref<32x128xf32, #tpu.memory_space<vmem>>, vector<32x128xf32>
    %cst_54 = arith.constant dense<0.000000e+00> : vector<16x128xf32>
    %243 = tpu.matmul %241, %242, %cst_54 {dimension_numbers = #tpu.dot_dimension_numbers<[1], [0], [0], [1], [0, 0, 1, 1], [], []>} : vector<16x32xf32>, vector<32x128xf32>, vector<16x128xf32> -> vector<16x128xf32>
    %c0_55 = arith.constant 0 : index
    %c0_56 = arith.constant 0 : index
    %244 = vector.load %arg7[%c0_55, %c0_56] : memref<1x128xf32, #tpu.memory_space<vmem>>, vector<1x128xf32>
    %245 = vector.broadcast %244 : vector<1x128xf32> to vector<16x128xf32>
    %246 = arith.addf %243, %245 : vector<16x128xf32>
    %c0_57 = arith.constant 0 : index
    %c0_58 = arith.constant 0 : index
    %247 = vector.load %arg6[%c0_57, %c0_58] : memref<32x128xf32, #tpu.memory_space<vmem>>, vector<32x128xf32>
    %cst_59 = arith.constant 0.000000e+00 : f32
    %248 = vector.broadcast %cst_59 : f32 to vector<2x32xf32>
    %cst_60 = arith.constant 0.000000e+00 : f32
    %249 = vector.broadcast %cst_60 : f32 to vector<2x32xf32>
    %250 = vector.extract_strided_slice %246 {offsets = [0, 0], sizes = [2, 128], strides = [1, 1]} : vector<16x128xf32> to vector<2x128xf32>
    %cst_61 = arith.constant dense<0.000000e+00> : vector<2x128xf32>
    %251 = tpu.matmul %248, %247, %cst_61 {dimension_numbers = #tpu.dot_dimension_numbers<[1], [0], [0], [1], [0, 0, 1, 1], [], []>} : vector<2x32xf32>, vector<32x128xf32>, vector<2x128xf32> -> vector<2x128xf32>
    %252 = arith.addf %250, %251 : vector<2x128xf32>
    %253 = vector.extract_strided_slice %252 {offsets = [0, 0], sizes = [2, 32], strides = [1, 1]} : vector<2x128xf32> to vector<2x32xf32>
    %254 = arith.negf %253 : vector<2x32xf32>
    %255 = math.exp %254 : vector<2x32xf32>
    %cst_62 = arith.constant 1.000000e+00 : f32
    %256 = vector.broadcast %cst_62 : f32 to vector<2x32xf32>
    %257 = arith.addf %256, %255 : vector<2x32xf32>
    %258 = arith.divf %256, %257 : vector<2x32xf32>
    %259 = vector.extract_strided_slice %252 {offsets = [0, 32], sizes = [2, 32], strides = [1, 1]} : vector<2x128xf32> to vector<2x32xf32>
    %260 = arith.negf %259 : vector<2x32xf32>
    %261 = math.exp %260 : vector<2x32xf32>
    %cst_63 = arith.constant 1.000000e+00 : f32
    %262 = vector.broadcast %cst_63 : f32 to vector<2x32xf32>
    %263 = arith.addf %262, %261 : vector<2x32xf32>
    %264 = arith.divf %262, %263 : vector<2x32xf32>
    %265 = vector.extract_strided_slice %252 {offsets = [0, 64], sizes = [2, 32], strides = [1, 1]} : vector<2x128xf32> to vector<2x32xf32>
    %266 = math.tanh %265 : vector<2x32xf32>
    %267 = vector.extract_strided_slice %252 {offsets = [0, 96], sizes = [2, 32], strides = [1, 1]} : vector<2x128xf32> to vector<2x32xf32>
    %268 = arith.negf %267 : vector<2x32xf32>
    %269 = math.exp %268 : vector<2x32xf32>
    %cst_64 = arith.constant 1.000000e+00 : f32
    %270 = vector.broadcast %cst_64 : f32 to vector<2x32xf32>
    %271 = arith.addf %270, %269 : vector<2x32xf32>
    %272 = arith.divf %270, %271 : vector<2x32xf32>
    %273 = arith.mulf %264, %249 : vector<2x32xf32>
    %274 = arith.mulf %258, %266 : vector<2x32xf32>
    %275 = arith.addf %273, %274 : vector<2x32xf32>
    %276 = math.tanh %275 : vector<2x32xf32>
    %277 = arith.mulf %272, %276 : vector<2x32xf32>
    %c0_65 = arith.constant 0 : index
    %c0_66 = arith.constant 0 : index
    %278 = vector.load %arg14[%c0_65, %c0_66] : memref<16x32xf32, #tpu.memory_space<vmem>>, vector<2x32xf32>
    tpu.vector_store %arg14[%c0_65, %c0_66], %277 {strides = array<i32>} : memref<16x32xf32, #tpu.memory_space<vmem>>, vector<2x32xf32>,
    %279 = vector.extract_strided_slice %246 {offsets = [2, 0], sizes = [2, 128], strides = [1, 1]} : vector<16x128xf32> to vector<2x128xf32>
    %cst_67 = arith.constant dense<0.000000e+00> : vector<2x128xf32>
    %280 = tpu.matmul %277, %247, %cst_67 {dimension_numbers = #tpu.dot_dimension_numbers<[1], [0], [0], [1], [0, 0, 1, 1], [], []>} : vector<2x32xf32>, vector<32x128xf32>, vector<2x128xf32> -> vector<2x128xf32>
    %281 = arith.addf %279, %280 : vector<2x128xf32>
    %282 = vector.extract_strided_slice %281 {offsets = [0, 0], sizes = [2, 32], strides = [1, 1]} : vector<2x128xf32> to vector<2x32xf32>
    %283 = arith.negf %282 : vector<2x32xf32>
    %284 = math.exp %283 : vector<2x32xf32>
    %cst_68 = arith.constant 1.000000e+00 : f32
    %285 = vector.broadcast %cst_68 : f32 to vector<2x32xf32>
    %286 = arith.addf %285, %284 : vector<2x32xf32>
    %287 = arith.divf %285, %286 : vector<2x32xf32>
    %288 = vector.extract_strided_slice %281 {offsets = [0, 32], sizes = [2, 32], strides = [1, 1]} : vector<2x128xf32> to vector<2x32xf32>
    %289 = arith.negf %288 : vector<2x32xf32>
    %290 = math.exp %289 : vector<2x32xf32>
    %cst_69 = arith.constant 1.000000e+00 : f32
    %291 = vector.broadcast %cst_69 : f32 to vector<2x32xf32>
    %292 = arith.addf %291, %290 : vector<2x32xf32>
    %293 = arith.divf %291, %292 : vector<2x32xf32>
    %294 = vector.extract_strided_slice %281 {offsets = [0, 64], sizes = [2, 32], strides = [1, 1]} : vector<2x128xf32> to vector<2x32xf32>
    %295 = math.tanh %294 : vector<2x32xf32>
    %296 = vector.extract_strided_slice %281 {offsets = [0, 96], sizes = [2, 32], strides = [1, 1]} : vector<2x128xf32> to vector<2x32xf32>
    %297 = arith.negf %296 : vector<2x32xf32>
    %298 = math.exp %297 : vector<2x32xf32>
    %cst_70 = arith.constant 1.000000e+00 : f32
    %299 = vector.broadcast %cst_70 : f32 to vector<2x32xf32>
    %300 = arith.addf %299, %298 : vector<2x32xf32>
    %301 = arith.divf %299, %300 : vector<2x32xf32>
    %302 = arith.mulf %293, %275 : vector<2x32xf32>
    %303 = arith.mulf %287, %295 : vector<2x32xf32>
    %304 = arith.addf %302, %303 : vector<2x32xf32>
    %305 = math.tanh %304 : vector<2x32xf32>
    %306 = arith.mulf %301, %305 : vector<2x32xf32>
    %c2_71 = arith.constant 2 : index
    %c0_72 = arith.constant 0 : index
    %307 = vector.load %arg14[%c2_71, %c0_72] : memref<16x32xf32, #tpu.memory_space<vmem>>, vector<2x32xf32>
    tpu.vector_store %arg14[%c2_71, %c0_72], %306 {strides = array<i32>} : memref<16x32xf32, #tpu.memory_space<vmem>>, vector<2x32xf32>,
    %308 = vector.extract_strided_slice %246 {offsets = [4, 0], sizes = [2, 128], strides = [1, 1]} : vector<16x128xf32> to vector<2x128xf32>
    %cst_73 = arith.constant dense<0.000000e+00> : vector<2x128xf32>
    %309 = tpu.matmul %306, %247, %cst_73 {dimension_numbers = #tpu.dot_dimension_numbers<[1], [0], [0], [1], [0, 0, 1, 1], [], []>} : vector<2x32xf32>, vector<32x128xf32>, vector<2x128xf32> -> vector<2x128xf32>
    %310 = arith.addf %308, %309 : vector<2x128xf32>
    %311 = vector.extract_strided_slice %310 {offsets = [0, 0], sizes = [2, 32], strides = [1, 1]} : vector<2x128xf32> to vector<2x32xf32>
    %312 = arith.negf %311 : vector<2x32xf32>
    %313 = math.exp %312 : vector<2x32xf32>
    %cst_74 = arith.constant 1.000000e+00 : f32
    %314 = vector.broadcast %cst_74 : f32 to vector<2x32xf32>
    %315 = arith.addf %314, %313 : vector<2x32xf32>
    %316 = arith.divf %314, %315 : vector<2x32xf32>
    %317 = vector.extract_strided_slice %310 {offsets = [0, 32], sizes = [2, 32], strides = [1, 1]} : vector<2x128xf32> to vector<2x32xf32>
    %318 = arith.negf %317 : vector<2x32xf32>
    %319 = math.exp %318 : vector<2x32xf32>
    %cst_75 = arith.constant 1.000000e+00 : f32
    %320 = vector.broadcast %cst_75 : f32 to vector<2x32xf32>
    %321 = arith.addf %320, %319 : vector<2x32xf32>
    %322 = arith.divf %320, %321 : vector<2x32xf32>
    %323 = vector.extract_strided_slice %310 {offsets = [0, 64], sizes = [2, 32], strides = [1, 1]} : vector<2x128xf32> to vector<2x32xf32>
    %324 = math.tanh %323 : vector<2x32xf32>
    %325 = vector.extract_strided_slice %310 {offsets = [0, 96], sizes = [2, 32], strides = [1, 1]} : vector<2x128xf32> to vector<2x32xf32>
    %326 = arith.negf %325 : vector<2x32xf32>
    %327 = math.exp %326 : vector<2x32xf32>
    %cst_76 = arith.constant 1.000000e+00 : f32
    %328 = vector.broadcast %cst_76 : f32 to vector<2x32xf32>
    %329 = arith.addf %328, %327 : vector<2x32xf32>
    %330 = arith.divf %328, %329 : vector<2x32xf32>
    %331 = arith.mulf %322, %304 : vector<2x32xf32>
    %332 = arith.mulf %316, %324 : vector<2x32xf32>
    %333 = arith.addf %331, %332 : vector<2x32xf32>
    %334 = math.tanh %333 : vector<2x32xf32>
    %335 = arith.mulf %330, %334 : vector<2x32xf32>
    %c4_77 = arith.constant 4 : index
    %c0_78 = arith.constant 0 : index
    %336 = vector.load %arg14[%c4_77, %c0_78] : memref<16x32xf32, #tpu.memory_space<vmem>>, vector<2x32xf32>
    tpu.vector_store %arg14[%c4_77, %c0_78], %335 {strides = array<i32>} : memref<16x32xf32, #tpu.memory_space<vmem>>, vector<2x32xf32>,
    %337 = vector.extract_strided_slice %246 {offsets = [6, 0], sizes = [2, 128], strides = [1, 1]} : vector<16x128xf32> to vector<2x128xf32>
    %cst_79 = arith.constant dense<0.000000e+00> : vector<2x128xf32>
    %338 = tpu.matmul %335, %247, %cst_79 {dimension_numbers = #tpu.dot_dimension_numbers<[1], [0], [0], [1], [0, 0, 1, 1], [], []>} : vector<2x32xf32>, vector<32x128xf32>, vector<2x128xf32> -> vector<2x128xf32>
    %339 = arith.addf %337, %338 : vector<2x128xf32>
    %340 = vector.extract_strided_slice %339 {offsets = [0, 0], sizes = [2, 32], strides = [1, 1]} : vector<2x128xf32> to vector<2x32xf32>
    %341 = arith.negf %340 : vector<2x32xf32>
    %342 = math.exp %341 : vector<2x32xf32>
    %cst_80 = arith.constant 1.000000e+00 : f32
    %343 = vector.broadcast %cst_80 : f32 to vector<2x32xf32>
    %344 = arith.addf %343, %342 : vector<2x32xf32>
    %345 = arith.divf %343, %344 : vector<2x32xf32>
    %346 = vector.extract_strided_slice %339 {offsets = [0, 32], sizes = [2, 32], strides = [1, 1]} : vector<2x128xf32> to vector<2x32xf32>
    %347 = arith.negf %346 : vector<2x32xf32>
    %348 = math.exp %347 : vector<2x32xf32>
    %cst_81 = arith.constant 1.000000e+00 : f32
    %349 = vector.broadcast %cst_81 : f32 to vector<2x32xf32>
    %350 = arith.addf %349, %348 : vector<2x32xf32>
    %351 = arith.divf %349, %350 : vector<2x32xf32>
    %352 = vector.extract_strided_slice %339 {offsets = [0, 64], sizes = [2, 32], strides = [1, 1]} : vector<2x128xf32> to vector<2x32xf32>
    %353 = math.tanh %352 : vector<2x32xf32>
    %354 = vector.extract_strided_slice %339 {offsets = [0, 96], sizes = [2, 32], strides = [1, 1]} : vector<2x128xf32> to vector<2x32xf32>
    %355 = arith.negf %354 : vector<2x32xf32>
    %356 = math.exp %355 : vector<2x32xf32>
    %cst_82 = arith.constant 1.000000e+00 : f32
    %357 = vector.broadcast %cst_82 : f32 to vector<2x32xf32>
    %358 = arith.addf %357, %356 : vector<2x32xf32>
    %359 = arith.divf %357, %358 : vector<2x32xf32>
    %360 = arith.mulf %351, %333 : vector<2x32xf32>
    %361 = arith.mulf %345, %353 : vector<2x32xf32>
    %362 = arith.addf %360, %361 : vector<2x32xf32>
    %363 = math.tanh %362 : vector<2x32xf32>
    %364 = arith.mulf %359, %363 : vector<2x32xf32>
    %c6_83 = arith.constant 6 : index
    %c0_84 = arith.constant 0 : index
    %365 = vector.load %arg14[%c6_83, %c0_84] : memref<16x32xf32, #tpu.memory_space<vmem>>, vector<2x32xf32>
    tpu.vector_store %arg14[%c6_83, %c0_84], %364 {strides = array<i32>} : memref<16x32xf32, #tpu.memory_space<vmem>>, vector<2x32xf32>,
    %366 = vector.extract_strided_slice %246 {offsets = [8, 0], sizes = [2, 128], strides = [1, 1]} : vector<16x128xf32> to vector<2x128xf32>
    %cst_85 = arith.constant dense<0.000000e+00> : vector<2x128xf32>
    %367 = tpu.matmul %364, %247, %cst_85 {dimension_numbers = #tpu.dot_dimension_numbers<[1], [0], [0], [1], [0, 0, 1, 1], [], []>} : vector<2x32xf32>, vector<32x128xf32>, vector<2x128xf32> -> vector<2x128xf32>
    %368 = arith.addf %366, %367 : vector<2x128xf32>
    %369 = vector.extract_strided_slice %368 {offsets = [0, 0], sizes = [2, 32], strides = [1, 1]} : vector<2x128xf32> to vector<2x32xf32>
    %370 = arith.negf %369 : vector<2x32xf32>
    %371 = math.exp %370 : vector<2x32xf32>
    %cst_86 = arith.constant 1.000000e+00 : f32
    %372 = vector.broadcast %cst_86 : f32 to vector<2x32xf32>
    %373 = arith.addf %372, %371 : vector<2x32xf32>
    %374 = arith.divf %372, %373 : vector<2x32xf32>
    %375 = vector.extract_strided_slice %368 {offsets = [0, 32], sizes = [2, 32], strides = [1, 1]} : vector<2x128xf32> to vector<2x32xf32>
    %376 = arith.negf %375 : vector<2x32xf32>
    %377 = math.exp %376 : vector<2x32xf32>
    %cst_87 = arith.constant 1.000000e+00 : f32
    %378 = vector.broadcast %cst_87 : f32 to vector<2x32xf32>
    %379 = arith.addf %378, %377 : vector<2x32xf32>
    %380 = arith.divf %378, %379 : vector<2x32xf32>
    %381 = vector.extract_strided_slice %368 {offsets = [0, 64], sizes = [2, 32], strides = [1, 1]} : vector<2x128xf32> to vector<2x32xf32>
    %382 = math.tanh %381 : vector<2x32xf32>
    %383 = vector.extract_strided_slice %368 {offsets = [0, 96], sizes = [2, 32], strides = [1, 1]} : vector<2x128xf32> to vector<2x32xf32>
    %384 = arith.negf %383 : vector<2x32xf32>
    %385 = math.exp %384 : vector<2x32xf32>
    %cst_88 = arith.constant 1.000000e+00 : f32
    %386 = vector.broadcast %cst_88 : f32 to vector<2x32xf32>
    %387 = arith.addf %386, %385 : vector<2x32xf32>
    %388 = arith.divf %386, %387 : vector<2x32xf32>
    %389 = arith.mulf %380, %362 : vector<2x32xf32>
    %390 = arith.mulf %374, %382 : vector<2x32xf32>
    %391 = arith.addf %389, %390 : vector<2x32xf32>
    %392 = math.tanh %391 : vector<2x32xf32>
    %393 = arith.mulf %388, %392 : vector<2x32xf32>
    %c8_89 = arith.constant 8 : index
    %c0_90 = arith.constant 0 : index
    %394 = vector.load %arg14[%c8_89, %c0_90] : memref<16x32xf32, #tpu.memory_space<vmem>>, vector<2x32xf32>
    tpu.vector_store %arg14[%c8_89, %c0_90], %393 {strides = array<i32>} : memref<16x32xf32, #tpu.memory_space<vmem>>, vector<2x32xf32>,
    %395 = vector.extract_strided_slice %246 {offsets = [10, 0], sizes = [2, 128], strides = [1, 1]} : vector<16x128xf32> to vector<2x128xf32>
    %cst_91 = arith.constant dense<0.000000e+00> : vector<2x128xf32>
    %396 = tpu.matmul %393, %247, %cst_91 {dimension_numbers = #tpu.dot_dimension_numbers<[1], [0], [0], [1], [0, 0, 1, 1], [], []>} : vector<2x32xf32>, vector<32x128xf32>, vector<2x128xf32> -> vector<2x128xf32>
    %397 = arith.addf %395, %396 : vector<2x128xf32>
    %398 = vector.extract_strided_slice %397 {offsets = [0, 0], sizes = [2, 32], strides = [1, 1]} : vector<2x128xf32> to vector<2x32xf32>
    %399 = arith.negf %398 : vector<2x32xf32>
    %400 = math.exp %399 : vector<2x32xf32>
    %cst_92 = arith.constant 1.000000e+00 : f32
    %401 = vector.broadcast %cst_92 : f32 to vector<2x32xf32>
    %402 = arith.addf %401, %400 : vector<2x32xf32>
    %403 = arith.divf %401, %402 : vector<2x32xf32>
    %404 = vector.extract_strided_slice %397 {offsets = [0, 32], sizes = [2, 32], strides = [1, 1]} : vector<2x128xf32> to vector<2x32xf32>
    %405 = arith.negf %404 : vector<2x32xf32>
    %406 = math.exp %405 : vector<2x32xf32>
    %cst_93 = arith.constant 1.000000e+00 : f32
    %407 = vector.broadcast %cst_93 : f32 to vector<2x32xf32>
    %408 = arith.addf %407, %406 : vector<2x32xf32>
    %409 = arith.divf %407, %408 : vector<2x32xf32>
    %410 = vector.extract_strided_slice %397 {offsets = [0, 64], sizes = [2, 32], strides = [1, 1]} : vector<2x128xf32> to vector<2x32xf32>
    %411 = math.tanh %410 : vector<2x32xf32>
    %412 = vector.extract_strided_slice %397 {offsets = [0, 96], sizes = [2, 32], strides = [1, 1]} : vector<2x128xf32> to vector<2x32xf32>
    %413 = arith.negf %412 : vector<2x32xf32>
    %414 = math.exp %413 : vector<2x32xf32>
    %cst_94 = arith.constant 1.000000e+00 : f32
    %415 = vector.broadcast %cst_94 : f32 to vector<2x32xf32>
    %416 = arith.addf %415, %414 : vector<2x32xf32>
    %417 = arith.divf %415, %416 : vector<2x32xf32>
    %418 = arith.mulf %409, %391 : vector<2x32xf32>
    %419 = arith.mulf %403, %411 : vector<2x32xf32>
    %420 = arith.addf %418, %419 : vector<2x32xf32>
    %421 = math.tanh %420 : vector<2x32xf32>
    %422 = arith.mulf %417, %421 : vector<2x32xf32>
    %c10_95 = arith.constant 10 : index
    %c0_96 = arith.constant 0 : index
    %423 = vector.load %arg14[%c10_95, %c0_96] : memref<16x32xf32, #tpu.memory_space<vmem>>, vector<2x32xf32>
    tpu.vector_store %arg14[%c10_95, %c0_96], %422 {strides = array<i32>} : memref<16x32xf32, #tpu.memory_space<vmem>>, vector<2x32xf32>,
    %424 = vector.extract_strided_slice %246 {offsets = [12, 0], sizes = [2, 128], strides = [1, 1]} : vector<16x128xf32> to vector<2x128xf32>
    %cst_97 = arith.constant dense<0.000000e+00> : vector<2x128xf32>
    %425 = tpu.matmul %422, %247, %cst_97 {dimension_numbers = #tpu.dot_dimension_numbers<[1], [0], [0], [1], [0, 0, 1, 1], [], []>} : vector<2x32xf32>, vector<32x128xf32>, vector<2x128xf32> -> vector<2x128xf32>
    %426 = arith.addf %424, %425 : vector<2x128xf32>
    %427 = vector.extract_strided_slice %426 {offsets = [0, 0], sizes = [2, 32], strides = [1, 1]} : vector<2x128xf32> to vector<2x32xf32>
    %428 = arith.negf %427 : vector<2x32xf32>
    %429 = math.exp %428 : vector<2x32xf32>
    %cst_98 = arith.constant 1.000000e+00 : f32
    %430 = vector.broadcast %cst_98 : f32 to vector<2x32xf32>
    %431 = arith.addf %430, %429 : vector<2x32xf32>
    %432 = arith.divf %430, %431 : vector<2x32xf32>
    %433 = vector.extract_strided_slice %426 {offsets = [0, 32], sizes = [2, 32], strides = [1, 1]} : vector<2x128xf32> to vector<2x32xf32>
    %434 = arith.negf %433 : vector<2x32xf32>
    %435 = math.exp %434 : vector<2x32xf32>
    %cst_99 = arith.constant 1.000000e+00 : f32
    %436 = vector.broadcast %cst_99 : f32 to vector<2x32xf32>
    %437 = arith.addf %436, %435 : vector<2x32xf32>
    %438 = arith.divf %436, %437 : vector<2x32xf32>
    %439 = vector.extract_strided_slice %426 {offsets = [0, 64], sizes = [2, 32], strides = [1, 1]} : vector<2x128xf32> to vector<2x32xf32>
    %440 = math.tanh %439 : vector<2x32xf32>
    %441 = vector.extract_strided_slice %426 {offsets = [0, 96], sizes = [2, 32], strides = [1, 1]} : vector<2x128xf32> to vector<2x32xf32>
    %442 = arith.negf %441 : vector<2x32xf32>
    %443 = math.exp %442 : vector<2x32xf32>
    %cst_100 = arith.constant 1.000000e+00 : f32
    %444 = vector.broadcast %cst_100 : f32 to vector<2x32xf32>
    %445 = arith.addf %444, %443 : vector<2x32xf32>
    %446 = arith.divf %444, %445 : vector<2x32xf32>
    %447 = arith.mulf %438, %420 : vector<2x32xf32>
    %448 = arith.mulf %432, %440 : vector<2x32xf32>
    %449 = arith.addf %447, %448 : vector<2x32xf32>
    %450 = math.tanh %449 : vector<2x32xf32>
    %451 = arith.mulf %446, %450 : vector<2x32xf32>
    %c12_101 = arith.constant 12 : index
    %c0_102 = arith.constant 0 : index
    %452 = vector.load %arg14[%c12_101, %c0_102] : memref<16x32xf32, #tpu.memory_space<vmem>>, vector<2x32xf32>
    tpu.vector_store %arg14[%c12_101, %c0_102], %451 {strides = array<i32>} : memref<16x32xf32, #tpu.memory_space<vmem>>, vector<2x32xf32>,
    %453 = vector.extract_strided_slice %246 {offsets = [14, 0], sizes = [2, 128], strides = [1, 1]} : vector<16x128xf32> to vector<2x128xf32>
    %cst_103 = arith.constant dense<0.000000e+00> : vector<2x128xf32>
    %454 = tpu.matmul %451, %247, %cst_103 {dimension_numbers = #tpu.dot_dimension_numbers<[1], [0], [0], [1], [0, 0, 1, 1], [], []>} : vector<2x32xf32>, vector<32x128xf32>, vector<2x128xf32> -> vector<2x128xf32>
    %455 = arith.addf %453, %454 : vector<2x128xf32>
    %456 = vector.extract_strided_slice %455 {offsets = [0, 0], sizes = [2, 32], strides = [1, 1]} : vector<2x128xf32> to vector<2x32xf32>
    %457 = arith.negf %456 : vector<2x32xf32>
    %458 = math.exp %457 : vector<2x32xf32>
    %cst_104 = arith.constant 1.000000e+00 : f32
    %459 = vector.broadcast %cst_104 : f32 to vector<2x32xf32>
    %460 = arith.addf %459, %458 : vector<2x32xf32>
    %461 = arith.divf %459, %460 : vector<2x32xf32>
    %462 = vector.extract_strided_slice %455 {offsets = [0, 32], sizes = [2, 32], strides = [1, 1]} : vector<2x128xf32> to vector<2x32xf32>
    %463 = arith.negf %462 : vector<2x32xf32>
    %464 = math.exp %463 : vector<2x32xf32>
    %cst_105 = arith.constant 1.000000e+00 : f32
    %465 = vector.broadcast %cst_105 : f32 to vector<2x32xf32>
    %466 = arith.addf %465, %464 : vector<2x32xf32>
    %467 = arith.divf %465, %466 : vector<2x32xf32>
    %468 = vector.extract_strided_slice %455 {offsets = [0, 64], sizes = [2, 32], strides = [1, 1]} : vector<2x128xf32> to vector<2x32xf32>
    %469 = math.tanh %468 : vector<2x32xf32>
    %470 = vector.extract_strided_slice %455 {offsets = [0, 96], sizes = [2, 32], strides = [1, 1]} : vector<2x128xf32> to vector<2x32xf32>
    %471 = arith.negf %470 : vector<2x32xf32>
    %472 = math.exp %471 : vector<2x32xf32>
    %cst_106 = arith.constant 1.000000e+00 : f32
    %473 = vector.broadcast %cst_106 : f32 to vector<2x32xf32>
    %474 = arith.addf %473, %472 : vector<2x32xf32>
    %475 = arith.divf %473, %474 : vector<2x32xf32>
    %476 = arith.mulf %467, %449 : vector<2x32xf32>
    %477 = arith.mulf %461, %469 : vector<2x32xf32>
    %478 = arith.addf %476, %477 : vector<2x32xf32>
    %479 = math.tanh %478 : vector<2x32xf32>
    %480 = arith.mulf %475, %479 : vector<2x32xf32>
    %c14_107 = arith.constant 14 : index
    %c0_108 = arith.constant 0 : index
    %481 = vector.load %arg14[%c14_107, %c0_108] : memref<16x32xf32, #tpu.memory_space<vmem>>, vector<2x32xf32>
    tpu.vector_store %arg14[%c14_107, %c0_108], %480 {strides = array<i32>} : memref<16x32xf32, #tpu.memory_space<vmem>>, vector<2x32xf32>,
    %c0_109 = arith.constant 0 : index
    %c0_110 = arith.constant 0 : index
    %482 = vector.load %arg14[%c0_109, %c0_110] : memref<16x32xf32, #tpu.memory_space<vmem>>, vector<16x32xf32>
    %c0_111 = arith.constant 0 : index
    %c0_112 = arith.constant 0 : index
    %483 = vector.load %arg8[%c0_111, %c0_112] : memref<32x128xf32, #tpu.memory_space<vmem>>, vector<32x128xf32>
    %cst_113 = arith.constant dense<0.000000e+00> : vector<16x128xf32>
    %484 = tpu.matmul %482, %483, %cst_113 {dimension_numbers = #tpu.dot_dimension_numbers<[1], [0], [0], [1], [0, 0, 1, 1], [], []>} : vector<16x32xf32>, vector<32x128xf32>, vector<16x128xf32> -> vector<16x128xf32>
    %c0_114 = arith.constant 0 : index
    %c0_115 = arith.constant 0 : index
    %485 = vector.load %arg10[%c0_114, %c0_115] : memref<1x128xf32, #tpu.memory_space<vmem>>, vector<1x128xf32>
    %486 = vector.broadcast %485 : vector<1x128xf32> to vector<16x128xf32>
    %487 = arith.addf %484, %486 : vector<16x128xf32>
    %c0_116 = arith.constant 0 : index
    %c0_117 = arith.constant 0 : index
    %488 = vector.load %arg9[%c0_116, %c0_117] : memref<32x128xf32, #tpu.memory_space<vmem>>, vector<32x128xf32>
    %cst_118 = arith.constant 0.000000e+00 : f32
    %489 = vector.broadcast %cst_118 : f32 to vector<2x32xf32>
    %cst_119 = arith.constant 0.000000e+00 : f32
    %490 = vector.broadcast %cst_119 : f32 to vector<2x32xf32>
    %491 = vector.extract_strided_slice %487 {offsets = [0, 0], sizes = [2, 128], strides = [1, 1]} : vector<16x128xf32> to vector<2x128xf32>
    %cst_120 = arith.constant dense<0.000000e+00> : vector<2x128xf32>
    %492 = tpu.matmul %489, %488, %cst_120 {dimension_numbers = #tpu.dot_dimension_numbers<[1], [0], [0], [1], [0, 0, 1, 1], [], []>} : vector<2x32xf32>, vector<32x128xf32>, vector<2x128xf32> -> vector<2x128xf32>
    %493 = arith.addf %491, %492 : vector<2x128xf32>
    %494 = vector.extract_strided_slice %493 {offsets = [0, 0], sizes = [2, 32], strides = [1, 1]} : vector<2x128xf32> to vector<2x32xf32>
    %495 = arith.negf %494 : vector<2x32xf32>
    %496 = math.exp %495 : vector<2x32xf32>
    %cst_121 = arith.constant 1.000000e+00 : f32
    %497 = vector.broadcast %cst_121 : f32 to vector<2x32xf32>
    %498 = arith.addf %497, %496 : vector<2x32xf32>
    %499 = arith.divf %497, %498 : vector<2x32xf32>
    %500 = vector.extract_strided_slice %493 {offsets = [0, 32], sizes = [2, 32], strides = [1, 1]} : vector<2x128xf32> to vector<2x32xf32>
    %501 = arith.negf %500 : vector<2x32xf32>
    %502 = math.exp %501 : vector<2x32xf32>
    %cst_122 = arith.constant 1.000000e+00 : f32
    %503 = vector.broadcast %cst_122 : f32 to vector<2x32xf32>
    %504 = arith.addf %503, %502 : vector<2x32xf32>
    %505 = arith.divf %503, %504 : vector<2x32xf32>
    %506 = vector.extract_strided_slice %493 {offsets = [0, 64], sizes = [2, 32], strides = [1, 1]} : vector<2x128xf32> to vector<2x32xf32>
    %507 = math.tanh %506 : vector<2x32xf32>
    %508 = vector.extract_strided_slice %493 {offsets = [0, 96], sizes = [2, 32], strides = [1, 1]} : vector<2x128xf32> to vector<2x32xf32>
    %509 = arith.negf %508 : vector<2x32xf32>
    %510 = math.exp %509 : vector<2x32xf32>
    %cst_123 = arith.constant 1.000000e+00 : f32
    %511 = vector.broadcast %cst_123 : f32 to vector<2x32xf32>
    %512 = arith.addf %511, %510 : vector<2x32xf32>
    %513 = arith.divf %511, %512 : vector<2x32xf32>
    %514 = arith.mulf %505, %490 : vector<2x32xf32>
    %515 = arith.mulf %499, %507 : vector<2x32xf32>
    %516 = arith.addf %514, %515 : vector<2x32xf32>
    %517 = math.tanh %516 : vector<2x32xf32>
    %518 = arith.mulf %513, %517 : vector<2x32xf32>
    %519 = vector.extract_strided_slice %487 {offsets = [2, 0], sizes = [2, 128], strides = [1, 1]} : vector<16x128xf32> to vector<2x128xf32>
    %cst_124 = arith.constant dense<0.000000e+00> : vector<2x128xf32>
    %520 = tpu.matmul %518, %488, %cst_124 {dimension_numbers = #tpu.dot_dimension_numbers<[1], [0], [0], [1], [0, 0, 1, 1], [], []>} : vector<2x32xf32>, vector<32x128xf32>, vector<2x128xf32> -> vector<2x128xf32>
    %521 = arith.addf %519, %520 : vector<2x128xf32>
    %522 = vector.extract_strided_slice %521 {offsets = [0, 0], sizes = [2, 32], strides = [1, 1]} : vector<2x128xf32> to vector<2x32xf32>
    %523 = arith.negf %522 : vector<2x32xf32>
    %524 = math.exp %523 : vector<2x32xf32>
    %cst_125 = arith.constant 1.000000e+00 : f32
    %525 = vector.broadcast %cst_125 : f32 to vector<2x32xf32>
    %526 = arith.addf %525, %524 : vector<2x32xf32>
    %527 = arith.divf %525, %526 : vector<2x32xf32>
    %528 = vector.extract_strided_slice %521 {offsets = [0, 32], sizes = [2, 32], strides = [1, 1]} : vector<2x128xf32> to vector<2x32xf32>
    %529 = arith.negf %528 : vector<2x32xf32>
    %530 = math.exp %529 : vector<2x32xf32>
    %cst_126 = arith.constant 1.000000e+00 : f32
    %531 = vector.broadcast %cst_126 : f32 to vector<2x32xf32>
    %532 = arith.addf %531, %530 : vector<2x32xf32>
    %533 = arith.divf %531, %532 : vector<2x32xf32>
    %534 = vector.extract_strided_slice %521 {offsets = [0, 64], sizes = [2, 32], strides = [1, 1]} : vector<2x128xf32> to vector<2x32xf32>
    %535 = math.tanh %534 : vector<2x32xf32>
    %536 = vector.extract_strided_slice %521 {offsets = [0, 96], sizes = [2, 32], strides = [1, 1]} : vector<2x128xf32> to vector<2x32xf32>
    %537 = arith.negf %536 : vector<2x32xf32>
    %538 = math.exp %537 : vector<2x32xf32>
    %cst_127 = arith.constant 1.000000e+00 : f32
    %539 = vector.broadcast %cst_127 : f32 to vector<2x32xf32>
    %540 = arith.addf %539, %538 : vector<2x32xf32>
    %541 = arith.divf %539, %540 : vector<2x32xf32>
    %542 = arith.mulf %533, %516 : vector<2x32xf32>
    %543 = arith.mulf %527, %535 : vector<2x32xf32>
    %544 = arith.addf %542, %543 : vector<2x32xf32>
    %545 = math.tanh %544 : vector<2x32xf32>
    %546 = arith.mulf %541, %545 : vector<2x32xf32>
    %547 = vector.extract_strided_slice %487 {offsets = [4, 0], sizes = [2, 128], strides = [1, 1]} : vector<16x128xf32> to vector<2x128xf32>
    %cst_128 = arith.constant dense<0.000000e+00> : vector<2x128xf32>
    %548 = tpu.matmul %546, %488, %cst_128 {dimension_numbers = #tpu.dot_dimension_numbers<[1], [0], [0], [1], [0, 0, 1, 1], [], []>} : vector<2x32xf32>, vector<32x128xf32>, vector<2x128xf32> -> vector<2x128xf32>
    %549 = arith.addf %547, %548 : vector<2x128xf32>
    %550 = vector.extract_strided_slice %549 {offsets = [0, 0], sizes = [2, 32], strides = [1, 1]} : vector<2x128xf32> to vector<2x32xf32>
    %551 = arith.negf %550 : vector<2x32xf32>
    %552 = math.exp %551 : vector<2x32xf32>
    %cst_129 = arith.constant 1.000000e+00 : f32
    %553 = vector.broadcast %cst_129 : f32 to vector<2x32xf32>
    %554 = arith.addf %553, %552 : vector<2x32xf32>
    %555 = arith.divf %553, %554 : vector<2x32xf32>
    %556 = vector.extract_strided_slice %549 {offsets = [0, 32], sizes = [2, 32], strides = [1, 1]} : vector<2x128xf32> to vector<2x32xf32>
    %557 = arith.negf %556 : vector<2x32xf32>
    %558 = math.exp %557 : vector<2x32xf32>
    %cst_130 = arith.constant 1.000000e+00 : f32
    %559 = vector.broadcast %cst_130 : f32 to vector<2x32xf32>
    %560 = arith.addf %559, %558 : vector<2x32xf32>
    %561 = arith.divf %559, %560 : vector<2x32xf32>
    %562 = vector.extract_strided_slice %549 {offsets = [0, 64], sizes = [2, 32], strides = [1, 1]} : vector<2x128xf32> to vector<2x32xf32>
    %563 = math.tanh %562 : vector<2x32xf32>
    %564 = vector.extract_strided_slice %549 {offsets = [0, 96], sizes = [2, 32], strides = [1, 1]} : vector<2x128xf32> to vector<2x32xf32>
    %565 = arith.negf %564 : vector<2x32xf32>
    %566 = math.exp %565 : vector<2x32xf32>
    %cst_131 = arith.constant 1.000000e+00 : f32
    %567 = vector.broadcast %cst_131 : f32 to vector<2x32xf32>
    %568 = arith.addf %567, %566 : vector<2x32xf32>
    %569 = arith.divf %567, %568 : vector<2x32xf32>
    %570 = arith.mulf %561, %544 : vector<2x32xf32>
    %571 = arith.mulf %555, %563 : vector<2x32xf32>
    %572 = arith.addf %570, %571 : vector<2x32xf32>
    %573 = math.tanh %572 : vector<2x32xf32>
    %574 = arith.mulf %569, %573 : vector<2x32xf32>
    %575 = vector.extract_strided_slice %487 {offsets = [6, 0], sizes = [2, 128], strides = [1, 1]} : vector<16x128xf32> to vector<2x128xf32>
    %cst_132 = arith.constant dense<0.000000e+00> : vector<2x128xf32>
    %576 = tpu.matmul %574, %488, %cst_132 {dimension_numbers = #tpu.dot_dimension_numbers<[1], [0], [0], [1], [0, 0, 1, 1], [], []>} : vector<2x32xf32>, vector<32x128xf32>, vector<2x128xf32> -> vector<2x128xf32>
    %577 = arith.addf %575, %576 : vector<2x128xf32>
    %578 = vector.extract_strided_slice %577 {offsets = [0, 0], sizes = [2, 32], strides = [1, 1]} : vector<2x128xf32> to vector<2x32xf32>
    %579 = arith.negf %578 : vector<2x32xf32>
    %580 = math.exp %579 : vector<2x32xf32>
    %cst_133 = arith.constant 1.000000e+00 : f32
    %581 = vector.broadcast %cst_133 : f32 to vector<2x32xf32>
    %582 = arith.addf %581, %580 : vector<2x32xf32>
    %583 = arith.divf %581, %582 : vector<2x32xf32>
    %584 = vector.extract_strided_slice %577 {offsets = [0, 32], sizes = [2, 32], strides = [1, 1]} : vector<2x128xf32> to vector<2x32xf32>
    %585 = arith.negf %584 : vector<2x32xf32>
    %586 = math.exp %585 : vector<2x32xf32>
    %cst_134 = arith.constant 1.000000e+00 : f32
    %587 = vector.broadcast %cst_134 : f32 to vector<2x32xf32>
    %588 = arith.addf %587, %586 : vector<2x32xf32>
    %589 = arith.divf %587, %588 : vector<2x32xf32>
    %590 = vector.extract_strided_slice %577 {offsets = [0, 64], sizes = [2, 32], strides = [1, 1]} : vector<2x128xf32> to vector<2x32xf32>
    %591 = math.tanh %590 : vector<2x32xf32>
    %592 = vector.extract_strided_slice %577 {offsets = [0, 96], sizes = [2, 32], strides = [1, 1]} : vector<2x128xf32> to vector<2x32xf32>
    %593 = arith.negf %592 : vector<2x32xf32>
    %594 = math.exp %593 : vector<2x32xf32>
    %cst_135 = arith.constant 1.000000e+00 : f32
    %595 = vector.broadcast %cst_135 : f32 to vector<2x32xf32>
    %596 = arith.addf %595, %594 : vector<2x32xf32>
    %597 = arith.divf %595, %596 : vector<2x32xf32>
    %598 = arith.mulf %589, %572 : vector<2x32xf32>
    %599 = arith.mulf %583, %591 : vector<2x32xf32>
    %600 = arith.addf %598, %599 : vector<2x32xf32>
    %601 = math.tanh %600 : vector<2x32xf32>
    %602 = arith.mulf %597, %601 : vector<2x32xf32>
    %603 = vector.extract_strided_slice %487 {offsets = [8, 0], sizes = [2, 128], strides = [1, 1]} : vector<16x128xf32> to vector<2x128xf32>
    %cst_136 = arith.constant dense<0.000000e+00> : vector<2x128xf32>
    %604 = tpu.matmul %602, %488, %cst_136 {dimension_numbers = #tpu.dot_dimension_numbers<[1], [0], [0], [1], [0, 0, 1, 1], [], []>} : vector<2x32xf32>, vector<32x128xf32>, vector<2x128xf32> -> vector<2x128xf32>
    %605 = arith.addf %603, %604 : vector<2x128xf32>
    %606 = vector.extract_strided_slice %605 {offsets = [0, 0], sizes = [2, 32], strides = [1, 1]} : vector<2x128xf32> to vector<2x32xf32>
    %607 = arith.negf %606 : vector<2x32xf32>
    %608 = math.exp %607 : vector<2x32xf32>
    %cst_137 = arith.constant 1.000000e+00 : f32
    %609 = vector.broadcast %cst_137 : f32 to vector<2x32xf32>
    %610 = arith.addf %609, %608 : vector<2x32xf32>
    %611 = arith.divf %609, %610 : vector<2x32xf32>
    %612 = vector.extract_strided_slice %605 {offsets = [0, 32], sizes = [2, 32], strides = [1, 1]} : vector<2x128xf32> to vector<2x32xf32>
    %613 = arith.negf %612 : vector<2x32xf32>
    %614 = math.exp %613 : vector<2x32xf32>
    %cst_138 = arith.constant 1.000000e+00 : f32
    %615 = vector.broadcast %cst_138 : f32 to vector<2x32xf32>
    %616 = arith.addf %615, %614 : vector<2x32xf32>
    %617 = arith.divf %615, %616 : vector<2x32xf32>
    %618 = vector.extract_strided_slice %605 {offsets = [0, 64], sizes = [2, 32], strides = [1, 1]} : vector<2x128xf32> to vector<2x32xf32>
    %619 = math.tanh %618 : vector<2x32xf32>
    %620 = vector.extract_strided_slice %605 {offsets = [0, 96], sizes = [2, 32], strides = [1, 1]} : vector<2x128xf32> to vector<2x32xf32>
    %621 = arith.negf %620 : vector<2x32xf32>
    %622 = math.exp %621 : vector<2x32xf32>
    %cst_139 = arith.constant 1.000000e+00 : f32
    %623 = vector.broadcast %cst_139 : f32 to vector<2x32xf32>
    %624 = arith.addf %623, %622 : vector<2x32xf32>
    %625 = arith.divf %623, %624 : vector<2x32xf32>
    %626 = arith.mulf %617, %600 : vector<2x32xf32>
    %627 = arith.mulf %611, %619 : vector<2x32xf32>
    %628 = arith.addf %626, %627 : vector<2x32xf32>
    %629 = math.tanh %628 : vector<2x32xf32>
    %630 = arith.mulf %625, %629 : vector<2x32xf32>
    %631 = vector.extract_strided_slice %487 {offsets = [10, 0], sizes = [2, 128], strides = [1, 1]} : vector<16x128xf32> to vector<2x128xf32>
    %cst_140 = arith.constant dense<0.000000e+00> : vector<2x128xf32>
    %632 = tpu.matmul %630, %488, %cst_140 {dimension_numbers = #tpu.dot_dimension_numbers<[1], [0], [0], [1], [0, 0, 1, 1], [], []>} : vector<2x32xf32>, vector<32x128xf32>, vector<2x128xf32> -> vector<2x128xf32>
    %633 = arith.addf %631, %632 : vector<2x128xf32>
    %634 = vector.extract_strided_slice %633 {offsets = [0, 0], sizes = [2, 32], strides = [1, 1]} : vector<2x128xf32> to vector<2x32xf32>
    %635 = arith.negf %634 : vector<2x32xf32>
    %636 = math.exp %635 : vector<2x32xf32>
    %cst_141 = arith.constant 1.000000e+00 : f32
    %637 = vector.broadcast %cst_141 : f32 to vector<2x32xf32>
    %638 = arith.addf %637, %636 : vector<2x32xf32>
    %639 = arith.divf %637, %638 : vector<2x32xf32>
    %640 = vector.extract_strided_slice %633 {offsets = [0, 32], sizes = [2, 32], strides = [1, 1]} : vector<2x128xf32> to vector<2x32xf32>
    %641 = arith.negf %640 : vector<2x32xf32>
    %642 = math.exp %641 : vector<2x32xf32>
    %cst_142 = arith.constant 1.000000e+00 : f32
    %643 = vector.broadcast %cst_142 : f32 to vector<2x32xf32>
    %644 = arith.addf %643, %642 : vector<2x32xf32>
    %645 = arith.divf %643, %644 : vector<2x32xf32>
    %646 = vector.extract_strided_slice %633 {offsets = [0, 64], sizes = [2, 32], strides = [1, 1]} : vector<2x128xf32> to vector<2x32xf32>
    %647 = math.tanh %646 : vector<2x32xf32>
    %648 = vector.extract_strided_slice %633 {offsets = [0, 96], sizes = [2, 32], strides = [1, 1]} : vector<2x128xf32> to vector<2x32xf32>
    %649 = arith.negf %648 : vector<2x32xf32>
    %650 = math.exp %649 : vector<2x32xf32>
    %cst_143 = arith.constant 1.000000e+00 : f32
    %651 = vector.broadcast %cst_143 : f32 to vector<2x32xf32>
    %652 = arith.addf %651, %650 : vector<2x32xf32>
    %653 = arith.divf %651, %652 : vector<2x32xf32>
    %654 = arith.mulf %645, %628 : vector<2x32xf32>
    %655 = arith.mulf %639, %647 : vector<2x32xf32>
    %656 = arith.addf %654, %655 : vector<2x32xf32>
    %657 = math.tanh %656 : vector<2x32xf32>
    %658 = arith.mulf %653, %657 : vector<2x32xf32>
    %659 = vector.extract_strided_slice %487 {offsets = [12, 0], sizes = [2, 128], strides = [1, 1]} : vector<16x128xf32> to vector<2x128xf32>
    %cst_144 = arith.constant dense<0.000000e+00> : vector<2x128xf32>
    %660 = tpu.matmul %658, %488, %cst_144 {dimension_numbers = #tpu.dot_dimension_numbers<[1], [0], [0], [1], [0, 0, 1, 1], [], []>} : vector<2x32xf32>, vector<32x128xf32>, vector<2x128xf32> -> vector<2x128xf32>
    %661 = arith.addf %659, %660 : vector<2x128xf32>
    %662 = vector.extract_strided_slice %661 {offsets = [0, 0], sizes = [2, 32], strides = [1, 1]} : vector<2x128xf32> to vector<2x32xf32>
    %663 = arith.negf %662 : vector<2x32xf32>
    %664 = math.exp %663 : vector<2x32xf32>
    %cst_145 = arith.constant 1.000000e+00 : f32
    %665 = vector.broadcast %cst_145 : f32 to vector<2x32xf32>
    %666 = arith.addf %665, %664 : vector<2x32xf32>
    %667 = arith.divf %665, %666 : vector<2x32xf32>
    %668 = vector.extract_strided_slice %661 {offsets = [0, 32], sizes = [2, 32], strides = [1, 1]} : vector<2x128xf32> to vector<2x32xf32>
    %669 = arith.negf %668 : vector<2x32xf32>
    %670 = math.exp %669 : vector<2x32xf32>
    %cst_146 = arith.constant 1.000000e+00 : f32
    %671 = vector.broadcast %cst_146 : f32 to vector<2x32xf32>
    %672 = arith.addf %671, %670 : vector<2x32xf32>
    %673 = arith.divf %671, %672 : vector<2x32xf32>
    %674 = vector.extract_strided_slice %661 {offsets = [0, 64], sizes = [2, 32], strides = [1, 1]} : vector<2x128xf32> to vector<2x32xf32>
    %675 = math.tanh %674 : vector<2x32xf32>
    %676 = vector.extract_strided_slice %661 {offsets = [0, 96], sizes = [2, 32], strides = [1, 1]} : vector<2x128xf32> to vector<2x32xf32>
    %677 = arith.negf %676 : vector<2x32xf32>
    %678 = math.exp %677 : vector<2x32xf32>
    %cst_147 = arith.constant 1.000000e+00 : f32
    %679 = vector.broadcast %cst_147 : f32 to vector<2x32xf32>
    %680 = arith.addf %679, %678 : vector<2x32xf32>
    %681 = arith.divf %679, %680 : vector<2x32xf32>
    %682 = arith.mulf %673, %656 : vector<2x32xf32>
    %683 = arith.mulf %667, %675 : vector<2x32xf32>
    %684 = arith.addf %682, %683 : vector<2x32xf32>
    %685 = math.tanh %684 : vector<2x32xf32>
    %686 = arith.mulf %681, %685 : vector<2x32xf32>
    %687 = vector.extract_strided_slice %487 {offsets = [14, 0], sizes = [2, 128], strides = [1, 1]} : vector<16x128xf32> to vector<2x128xf32>
    %cst_148 = arith.constant dense<0.000000e+00> : vector<2x128xf32>
    %688 = tpu.matmul %686, %488, %cst_148 {dimension_numbers = #tpu.dot_dimension_numbers<[1], [0], [0], [1], [0, 0, 1, 1], [], []>} : vector<2x32xf32>, vector<32x128xf32>, vector<2x128xf32> -> vector<2x128xf32>
    %689 = arith.addf %687, %688 : vector<2x128xf32>
    %690 = vector.extract_strided_slice %689 {offsets = [0, 0], sizes = [2, 32], strides = [1, 1]} : vector<2x128xf32> to vector<2x32xf32>
    %691 = arith.negf %690 : vector<2x32xf32>
    %692 = math.exp %691 : vector<2x32xf32>
    %cst_149 = arith.constant 1.000000e+00 : f32
    %693 = vector.broadcast %cst_149 : f32 to vector<2x32xf32>
    %694 = arith.addf %693, %692 : vector<2x32xf32>
    %695 = arith.divf %693, %694 : vector<2x32xf32>
    %696 = vector.extract_strided_slice %689 {offsets = [0, 32], sizes = [2, 32], strides = [1, 1]} : vector<2x128xf32> to vector<2x32xf32>
    %697 = arith.negf %696 : vector<2x32xf32>
    %698 = math.exp %697 : vector<2x32xf32>
    %cst_150 = arith.constant 1.000000e+00 : f32
    %699 = vector.broadcast %cst_150 : f32 to vector<2x32xf32>
    %700 = arith.addf %699, %698 : vector<2x32xf32>
    %701 = arith.divf %699, %700 : vector<2x32xf32>
    %702 = vector.extract_strided_slice %689 {offsets = [0, 64], sizes = [2, 32], strides = [1, 1]} : vector<2x128xf32> to vector<2x32xf32>
    %703 = math.tanh %702 : vector<2x32xf32>
    %704 = vector.extract_strided_slice %689 {offsets = [0, 96], sizes = [2, 32], strides = [1, 1]} : vector<2x128xf32> to vector<2x32xf32>
    %705 = arith.negf %704 : vector<2x32xf32>
    %706 = math.exp %705 : vector<2x32xf32>
    %cst_151 = arith.constant 1.000000e+00 : f32
    %707 = vector.broadcast %cst_151 : f32 to vector<2x32xf32>
    %708 = arith.addf %707, %706 : vector<2x32xf32>
    %709 = arith.divf %707, %708 : vector<2x32xf32>
    %710 = arith.mulf %701, %684 : vector<2x32xf32>
    %711 = arith.mulf %695, %703 : vector<2x32xf32>
    %712 = arith.addf %710, %711 : vector<2x32xf32>
    %713 = math.tanh %712 : vector<2x32xf32>
    %714 = arith.mulf %709, %713 : vector<2x32xf32>
    %c0_152 = arith.constant 0 : index
    %c0_153 = arith.constant 0 : index
    %715 = vector.load %arg11[%c0_152, %c0_153] : memref<32x128xf32, #tpu.memory_space<vmem>>, vector<32x128xf32>
    %cst_154 = arith.constant dense<0.000000e+00> : vector<2x128xf32>
    %716 = tpu.matmul %714, %715, %cst_154 {dimension_numbers = #tpu.dot_dimension_numbers<[1], [0], [0], [1], [0, 0, 1, 1], [], []>} : vector<2x32xf32>, vector<32x128xf32>, vector<2x128xf32> -> vector<2x128xf32>
    %c0_155 = arith.constant 0 : index
    %c0_156 = arith.constant 0 : index
    %717 = vector.load %arg12[%c0_155, %c0_156] : memref<1x128xf32, #tpu.memory_space<vmem>>, vector<1x128xf32>
    %718 = vector.broadcast %717 : vector<1x128xf32> to vector<2x128xf32>
    %719 = arith.addf %716, %718 : vector<2x128xf32>
    %c0_157 = arith.constant 0 : index
    %c0_158 = arith.constant 0 : index
    %720 = vector.load %arg13[%c0_157, %c0_158] : memref<2x128xf32, #tpu.memory_space<vmem>>, vector<2x128xf32>
    tpu.vector_store %arg13[%c0_157, %c0_158], %719 {strides = array<i32>} : memref<2x128xf32, #tpu.memory_space<vmem>>, vector<2x128xf32>,
    return
  }
  func.func @transform_0(%arg0: i32) -> (i32, i32) {
    %c0_i32 = arith.constant 0 : i32
    %c0_i32_0 = arith.constant 0 : i32
    %c0_i32_1 = arith.constant 0 : i32
    return %c0_i32, %c0_i32_0 : i32, i32
  }
  func.func @transform_1(%arg0: i32) -> (i32, i32) {
    %c0_i32 = arith.constant 0 : i32
    %c0_i32_0 = arith.constant 0 : i32
    %c0_i32_1 = arith.constant 0 : i32
    return %c0_i32, %c0_i32_0 : i32, i32
  }
  func.func @transform_2(%arg0: i32) -> (i32, i32) {
    %c0_i32 = arith.constant 0 : i32
    %c0_i32_0 = arith.constant 0 : i32
    %c0_i32_1 = arith.constant 0 : i32
    return %c0_i32, %c0_i32_0 : i32, i32
  }
  func.func @transform_3(%arg0: i32) -> (i32, i32) {
    %c0_i32 = arith.constant 0 : i32
    %c0_i32_0 = arith.constant 0 : i32
    %c0_i32_1 = arith.constant 0 : i32
    return %c0_i32, %c0_i32_0 : i32, i32
  }
  func.func @transform_4(%arg0: i32) -> (i32, i32) {
    %c0_i32 = arith.constant 0 : i32
    %c0_i32_0 = arith.constant 0 : i32
    %c0_i32_1 = arith.constant 0 : i32
    return %c0_i32, %c0_i32_0 : i32, i32
  }
  func.func @transform_5(%arg0: i32) -> (i32, i32) {
    %c0_i32 = arith.constant 0 : i32
    %c0_i32_0 = arith.constant 0 : i32
    %c0_i32_1 = arith.constant 0 : i32
    return %c0_i32, %c0_i32_0 : i32, i32
  }
  func.func @transform_6(%arg0: i32) -> (i32, i32) {
    %c0_i32 = arith.constant 0 : i32
    %c0_i32_0 = arith.constant 0 : i32
    %c0_i32_1 = arith.constant 0 : i32
    return %c0_i32, %c0_i32_0 : i32, i32
  }
  func.func @transform_7(%arg0: i32) -> (i32, i32) {
    %c0_i32 = arith.constant 0 : i32
    %c0_i32_0 = arith.constant 0 : i32
    %c0_i32_1 = arith.constant 0 : i32
    return %c0_i32, %c0_i32_0 : i32, i32
  }
  func.func @transform_8(%arg0: i32) -> (i32, i32) {
    %c0_i32 = arith.constant 0 : i32
    %c0_i32_0 = arith.constant 0 : i32
    %c0_i32_1 = arith.constant 0 : i32
    return %c0_i32, %c0_i32_0 : i32, i32
  }
  func.func @transform_9(%arg0: i32) -> (i32, i32) {
    %c0_i32 = arith.constant 0 : i32
    %c0_i32_0 = arith.constant 0 : i32
    %c0_i32_1 = arith.constant 0 : i32
    return %c0_i32, %c0_i32_0 : i32, i32
  }
  func.func @transform_10(%arg0: i32) -> (i32, i32) {
    %c0_i32 = arith.constant 0 : i32
    %c0_i32_0 = arith.constant 0 : i32
    %c0_i32_1 = arith.constant 0 : i32
    return %c0_i32, %c0_i32_0 : i32, i32
  }
  func.func @transform_11(%arg0: i32) -> (i32, i32) {
    %c0_i32 = arith.constant 0 : i32
    %c0_i32_0 = arith.constant 0 : i32
    %c0_i32_1 = arith.constant 0 : i32
    return %c0_i32, %c0_i32_0 : i32, i32
  }
  func.func @transform_12(%arg0: i32) -> (i32, i32) {
    %c0_i32 = arith.constant 0 : i32
    %c0_i32_0 = arith.constant 0 : i32
    %c0_i32_1 = arith.constant 0 : i32
    return %c0_i32, %c0_i32_0 : i32, i32
  }
}

</mosaic_0001>

<bundles_post_ra>
// kernel: tpu_custom_call.1
= control target key start
LH: loop header
LB: loop body
LE: loop exit
PB: predicated region body
PF: predicated region fallthrough
CT: control target
= control target key end

     0   :  { %17 = vsyncpa [#allocation4], 0  ;;  %s4724_s0 = inlined_call_operand.vmem [shape: f32[16,8], index: 0, kind: input, shape index: {}]   ;;  %s4725_s1 = inlined_call_operand.hbm [shape: f32[8,128], index: 1, kind: input, shape index: {}]   ;;  %s4726_s2 = inlined_call_operand.hbm [shape: f32[32,128], index: 2, kind: input, shape index: {}]   ;;  %s4727_s3 = inlined_call_operand.vmem [shape: f32[1,128], index: 3, kind: input, shape index: {}]   ;;  %s4728_s4 = inlined_call_operand.vmem [shape: f32[32,128], index: 4, kind: input, shape index: {}]   ;;  %s4729_s5 = inlined_call_operand.hbm [shape: f32[32,128], index: 5, kind: input, shape index: {}]   ;;  %s4730_s6 = inlined_call_operand.vmem [shape: f32[1,128], index: 6, kind: input, shape index: {}]   ;;  %s4731_s7 = inlined_call_operand.hbm [shape: f32[32,128], index: 7, kind: input, shape index: {}]   ;;  %s4732_s8 = inlined_call_operand.hbm [shape: f32[32,128], index: 8, kind: input, shape index: {}]   ;;  %s4733_s9 = inlined_call_operand.vmem [shape: f32[1,128], index: 9, kind: input, shape index: {}]   ;;  %s4734_s10 = inlined_call_operand.hbm [shape: f32[32,128], index: 10, kind: input, shape index: {}]   ;;  %s4735_s11 = inlined_call_operand.vmem [shape: f32[1,128], index: 11, kind: input, shape index: {}]   ;;  %s4736_s12 = inlined_call_operand.hbm [shape: f32[2,128], index: 12, kind: output, shape index: {}]  }
   0x1   :  { %18 = vsyncpa [#allocation7], 0 }
   0x2   :  { %19 = vsyncpa [#allocation10], 0 }
   0x3   :  { %20 = vsyncpa [#allocation13], 0 }
   0x4   :  { %21 = vsyncpa [#allocation5], 0  ;;  %s4137_s21 = smov [#allocation6]   ;;  %s3973_s25 = scalar_lea.hbm %s4726_s2, 512 }
   0x5   :  { %s39_s22 = sshll.u32 %s4137_s21, 4  ;;  %p3974_p0 = scmp.ne.s32.totalorder %s4726_s2, %s3973_s25  ;;  %s40_s22 = int_to_ptr.vmem [resolvable:$true] %s39_s22 }
   0x6   :  { %p3977_p1 = scmp.lt.u32.totalorder %s3973_s25, %s4726_s2 }
   0x8   :  { %p3979_p2 = pnand %p3977_p1, %p3974_p0 }
   0xa   :  { %3982 = shalt.err (!%p3979_p2)
}
   0xb   :  { %s3983_s30 = scalar_lea.vmem %s40_s22, 512  ;;  %p3988_p4 = scmp.lt.s32.totalorder %s40_s22, %s40_s22 }
   0xc   :  { %p3984_p3 = scmp.ne.s32.totalorder %s40_s22, %s3983_s30  ;;  %p3989_p5 = scmp.lt.s32.totalorder %s3983_s30, %s3983_s30 }
   0xe   :  { %p3990_p6 = por %p3989_p5, %p3988_p4 }
  0x10   :  { %p3991_p7 = pnand %p3990_p6, %p3984_p3 }
  0x12   :  { %3994 = shalt.err (!%p3991_p7)
}
  0x13   :  { %s4138_s13 = smov 128   ;;  %s4139_s14 = smov 8  }
  0x14   :  { %45 = dma.hbm_to_vmem [thread:$0]  %s4726_s2, 512, %s40_s22, [#allocation7], %s4138_s13, %s4138_s13, %s4139_s14  }
  0x15   :  { %s4140_s17 = smov [#allocation9]   ;;  %s4141_s19 = smov [#allocation3]  }
  0x16   :  { %s69_s18 = sshll.u32 %s4140_s17, 4  ;;  %s30_s20 = sshll.u32 %s4141_s19, 4  ;;  %s70_s18 = int_to_ptr.vmem [resolvable:$true] %s69_s18  ;;  %s31_s20 = int_to_ptr.vmem [resolvable:$true] %s30_s20 }
  0x17   :  { %s3995_s24 = scalar_lea.hbm %s4731_s7, 512 }
  0x18   :  { %p3996_p8 = scmp.ne.s32.totalorder %s4731_s7, %s3995_s24  ;;  %p3999_p9 = scmp.lt.u32.totalorder %s3995_s24, %s4731_s7 }
  0x1a   :  { %p4001_p10 = pnand %p3999_p9, %p3996_p8 }
  0x1c   :  { %4004 = shalt.err (!%p4001_p10)
}
  0x1d   :  { %s4005_s2 = scalar_lea.vmem %s70_s18, 512  ;;  %p4010_p12 = scmp.lt.s32.totalorder %s70_s18, %s70_s18 }
  0x1e   :  { %p4006_p11 = scmp.ne.s32.totalorder %s70_s18, %s4005_s2  ;;  %p4011_p13 = scmp.lt.s32.totalorder %s4005_s2, %s4005_s2 }
  0x20   :  { %p4012_p0 = por %p4011_p13, %p4010_p12 }
  0x22   :  { %p4013_p1 = pnand %p4012_p0, %p4006_p11 }
  0x24   :  { %4016 = shalt.err (!%p4013_p1)
}
  0x25   :  { %75 = dma.hbm_to_vmem [thread:$0]  %s4731_s7, 512, %s70_s18, [#allocation10], %s4138_s13, %s4138_s13, %s4139_s14  }
  0x26   :  { %s4017_s16 = scalar_lea.hbm %s4725_s1, 128 }
  0x27   :  { %p4018_p2 = scmp.ne.s32.totalorder %s4725_s1, %s4017_s16  ;;  %p4021_p3 = scmp.lt.u32.totalorder %s4017_s16, %s4725_s1 }
  0x29   :  { %p4023_p4 = pnand %p4021_p3, %p4018_p2 }
  0x2b   :  { %4026 = shalt.err (!%p4023_p4)
}
  0x2c   :  { %s4027_s24 = scalar_lea.vmem %s31_s20, 128  ;;  %p4032_p6 = scmp.lt.s32.totalorder %s31_s20, %s31_s20 }
  0x2d   :  { %p4028_p5 = scmp.ne.s32.totalorder %s31_s20, %s4027_s24  ;;  %p4033_p7 = scmp.lt.s32.totalorder %s4027_s24, %s4027_s24 }
  0x2f   :  { %p4034_p8 = por %p4033_p7, %p4032_p6 }
  0x31   :  { %p4035_p9 = pnand %p4034_p8, %p4028_p5 }
  0x33   :  { %4038 = shalt.err (!%p4035_p9)
}
  0x34   :  { %33 = dma.hbm_to_vmem [thread:$0]  %s4725_s1, 128, %s31_s20, [#allocation4]  }
  0x35   :  { %s4142_s25 = smov [#allocation8]   ;;  %s4143_s27 = smov [#allocation11]  }
  0x36   :  { %s55_s26 = sshll.u32 %s4142_s25, 4  ;;  %s81_s28 = sshll.u32 %s4143_s27, 4  ;;  %s56_s26 = int_to_ptr.vmem [resolvable:$true] %s55_s26  ;;  %s82_s28 = int_to_ptr.vmem [resolvable:$true] %s81_s28 }
  0x37   :  { %s4039_s29 = scalar_lea.hbm %s4729_s5, 512 }
  0x38   :  { %p4040_p10 = scmp.ne.s32.totalorder %s4729_s5, %s4039_s29  ;;  %p4043_p11 = scmp.lt.u32.totalorder %s4039_s29, %s4729_s5 }
  0x3a   :  { %p4045_p12 = pnand %p4043_p11, %p4040_p10 }
  0x3c   :  { %4048 = shalt.err (!%p4045_p12)
}
  0x3d   :  { %s4049_s1 = scalar_lea.vmem %s56_s26, 512  ;;  %p4054_p0 = scmp.lt.s32.totalorder %s56_s26, %s56_s26 }
  0x3e   :  { %p4050_p13 = scmp.ne.s32.totalorder %s56_s26, %s4049_s1  ;;  %p4055_p1 = scmp.lt.s32.totalorder %s4049_s1, %s4049_s1 }
  0x40   :  { %p4056_p2 = por %p4055_p1, %p4054_p0 }
  0x42   :  { %p4057_p3 = pnand %p4056_p2, %p4050_p13 }
  0x44   :  { %4060 = shalt.err (!%p4057_p3)
}
  0x45   :  { %61 = dma.hbm_to_vmem [thread:$0]  %s4729_s5, 512, %s56_s26, [#allocation7], %s4138_s13, %s4138_s13, %s4139_s14  }
  0x46   :  { %s4061_s24 = scalar_lea.hbm %s4732_s8, 512 }
  0x47   :  { %p4062_p4 = scmp.ne.s32.totalorder %s4732_s8, %s4061_s24  ;;  %p4065_p5 = scmp.lt.u32.totalorder %s4061_s24, %s4732_s8 }
  0x49   :  { %p4067_p6 = pnand %p4065_p5, %p4062_p4 }
  0x4b   :  { %4070 = shalt.err (!%p4067_p6)
}
  0x4c   :  { %s4071_s2 = scalar_lea.vmem %s82_s28, 512  ;;  %p4076_p8 = scmp.lt.s32.totalorder %s82_s28, %s82_s28 }
  0x4d   :  { %p4072_p7 = scmp.ne.s32.totalorder %s82_s28, %s4071_s2  ;;  %p4077_p9 = scmp.lt.s32.totalorder %s4071_s2, %s4071_s2 }
  0x4f   :  { %p4078_p10 = por %p4077_p9, %p4076_p8 }
  0x51   :  { %p4079_p11 = pnand %p4078_p10, %p4072_p7 }
  0x53   :  { %4082 = shalt.err (!%p4079_p11)
}
  0x54   :  { %87 = dma.hbm_to_vmem [thread:$0]  %s4732_s8, 512, %s82_s28, [#allocation10], %s4138_s13, %s4138_s13, %s4139_s14  }
  0x55   :  { %s4144_s22 = smov [#allocation12]   ;;  %s4083_s16 = scalar_lea.hbm %s4734_s10, 512 }
  0x56   :  { %s95_s29 = sshll.u32 %s4144_s22, 4  ;;  %p4084_p12 = scmp.ne.s32.totalorder %s4734_s10, %s4083_s16  ;;  %s96_s29 = int_to_ptr.vmem [resolvable:$true] %s95_s29 }
  0x57   :  { %p4087_p13 = scmp.lt.u32.totalorder %s4083_s16, %s4734_s10 }
  0x59   :  { %p4089_p0 = pnand %p4087_p13, %p4084_p12 }
  0x5b   :  { %4092 = shalt.err (!%p4089_p0)
}
  0x5c   :  { %s4093_s21 = scalar_lea.vmem %s96_s29, 512  ;;  %p4098_p2 = scmp.lt.s32.totalorder %s96_s29, %s96_s29 }
  0x5d   :  { %p4094_p1 = scmp.ne.s32.totalorder %s96_s29, %s4093_s21  ;;  %p4099_p3 = scmp.lt.s32.totalorder %s4093_s21, %s4093_s21 }
  0x5f   :  { %p4100_p4 = por %p4099_p3, %p4098_p2 }
  0x61   :  { %p4101_p5 = pnand %p4100_p4, %p4094_p1 }
  0x63   :  { %4104 = shalt.err (!%p4101_p5)
}
  0x64   :  { %101 = dma.hbm_to_vmem [thread:$0]  %s4734_s10, 512, %s96_s29, [#allocation13], %s4138_s13, %s4138_s13, %s4139_s14  }
  0x65   :  { %4127 = dma.done.wait [#allocation4], 128  }
  0x66   :  { %4128 = vsyncadd [#allocation4], 4294967168 }
  0x67   :  { %4129 = dma.done.wait [#allocation7], 1024  }
  0x68   :  { %4130 = vsyncadd [#allocation7], 4294966272 }
  0x69   :  { %4131 = dma.done.wait [#allocation10], 1024  }
  0x6a   :  { %4132 = vsyncadd [#allocation10], 4294966272 }
  0x6b   :  { %4133 = dma.done.wait [#allocation13], 512  }
  0x6c   :  { %4134 = vsyncadd [#allocation13], 4294966784  ;;  %v4145_v0 = vmov 0.0|0.0   ;;  %vm4146_vm0 = vmmov 0   ;;  %v4147_v1 = vmov 0.0   ;;  %vm132_vm1 = vcmask 64512  }
  0x6d   :  { %3601 = vmatprep.subr.bf16.mxu1 %v4145_v0  ;;  %3312 = vmatprep.mubr.msk.f32.mxu1 %vm4146_vm0, %v4147_v1  ;;  %v214_v2 = vld [vmem:[#allocation6] sm:$0xff]  ;;  %v215_v3 = vld [vmem:[#allocation6 + $0x8] sm:$0xff]  ;;  %v124_v4 = vld [vmem:[#allocation3] sm:$0xff]  ;;  %s4148_s7 = smov 64   ;;  %vm321_vm2 = vcmask 254976   ;;  %vm218_vm3 = vcmask 261120  }
  0x6e   :  { %v4306_v5 = vpack.c.bf16 %v215_v3, %v214_v2  ;;  %3299 = vmatprep.subr.mxu0 %v124_v4  ;;  %v122_v6 = vld [vmem:[%s4724_s0] sm:$0xff]  ;;  %v123_v7 = vld [vmem:[%s4724_s0 + $0x8] sm:$0xff]  ;;  %v216_v8 = vld [vmem:[#allocation6 + $0x10] sm:$0xff]  ;;  %vm430_vm4 = vcmask 257026   ;;  %vm654_vm5 = vcmask 261126   ;;  %vm542_vm6 = vcmask 259076  }
  0x6f   :  { %3300 = vmatpush3.msra.mxu0 %v124_v4  ;;  %3301 = vmatprep.mubr.msk.f32.mxu0 %vm132_vm1, %v122_v6  ;;  %v217_v9 = vld [vmem:[#allocation6 + $0x18] sm:$0xff]  ;;  %s4150_s17 = smov [#allocation14]  }
  0x70   :  { %3603 = vmatpush3.bf16.msra.mxu1 %v4306_v5  ;;  %3302 = vmatmul.mubr.msk.f32.vlgmr.msra.gmra.mrb[0].mxu0 %vm132_vm1, %v123_v7  ;;  %v4315_v10 = vpack.c.bf16 %v217_v9, %v216_v8  ;;  %v3103_v11 = vld [vmem:[%s4727_s3] ss:$0 sm:$0xff]  ;;  %s4149_s3 = smov 32   ;;  %s3091_s1 = sshll.u32 %s4150_s17, 4  ;;  %s3092_s1 = int_to_ptr.vmem [resolvable:$true] %s3091_s1 }
  0x71   :  { %3604 = vmatprep.subr.bf16.mxu1 %v4145_v0  ;;  %3607 = vmatprep.subr.bf16.mxu0 %v4145_v0  ;;  %s4105_s20 = scalar_lea.vmem %s3092_s1, 32  ;;  %p4110_p7 = scmp.lt.s32.totalorder %s3092_s1, %s3092_s1 }
  0x72   :  { %3609 = vmatpush3.bf16.msra.mxu0 %v4306_v5  ;;  %3323 = vmatprep.mubr.msk.f32.mxu0 %vm4146_vm0, %v4147_v1  ;;  %p4106_p6 = scmp.ne.s32.totalorder %s3092_s1, %s4105_s20  ;;  %p4111_p8 = scmp.lt.s32.totalorder %s4105_s20, %s4105_s20 }
  0x73   :  { %3610 = vmatprep.subr.bf16.mxu0 %v4145_v0 }
  0x74   :  { %3606 = vmatpush3.bf16.msra.mxu1 %v4315_v10  ;;  %p4112_p9 = por %p4111_p8, %p4110_p7 }
  0x75   :  { %3613 = vmatprep.subr.bf16.mxu1 %v4145_v0 }
  0x76   :  { %3612 = vmatpush3.bf16.msra.mxu0 %v4315_v10  ;;  %p4113_p10 = pnand %p4112_p9, %p4106_p6 }
  0x77   :  { %3313 = vmatmul.mubr.f32.vlgmr.msra.gmra.mrb[0].mxu1 %v4147_v1  ;;  %3619 = vmatprep.subr.bf16.mxu0 %v4145_v0 }
  0x78   :  { %3615 = vmatpush3.bf16.msra.mxu1 %v4306_v5  ;;  %3334 = vmatprep.mubr.msk.f32.mxu1 %vm4146_vm0, %v4147_v1 }
  0x79   :  { %3616 = vmatprep.subr.bf16.mxu1 %v4145_v0 }
  0x7c   :  { %3618 = vmatpush3.bf16.msra.mxu1 %v4315_v10 }
  0x7d   :  { %3625 = vmatprep.subr.bf16.mxu1 %v4145_v0 }
 0x143   :  { %v3303_v12 = vpop.f32.mrb[0].mxu0 }
 0x144   :  { %v4337_v13 = vadd.f32 %v3303_v12, %v3103_v11  ;;  %v205_v14 = vpop.f32.mrb[1].mxu0 }
 0x145   :  { %v4339_v15 = vadd.f32 %v3103_v11, %v205_v14 }
 0x14a   :  { %v288_v16 = vpop.f32.mrb[0].mxu1 }
 0x14b   :  { %v292_v17 = vadd.f32 %v288_v16, %v4339_v15  ;;  %v3314_v18 = vpop.f32.mrb[1].mxu1 }
 0x14d   :  { %3781 = vtanh.f32 %v292_v17  ;;  %v3106_v20 = vmul.f32 -1.442695, %v292_v17 }
 0x14f   :  { %3783 = vpow2.f32 %v3106_v20 }
 0x157   :  { %v3782_v19 = vpop.eup %3781 }
 0x158   :  { %302 = vrot.lane.b32.xlu0 %v3782_v19, %s4148_s7 }
 0x159   :  { %v3784_v21 = vpop.eup %3783 }
 0x15a   :  { %v296_v22 = vadd.f32 1.0, %v3784_v21 }
 0x15c   :  { %3785 = vrcp.f32 %v296_v22 }
 0x166   :  { %v3786_v23 = vpop.eup %3785 }
 0x167   :  { %v300_v26 = vmul.f32 0.0, %v3786_v23 }
 0x1ca   :  { %v303_v24 = vpop.permute.xlu0 %302 }
 0x1cb   :  { %v305_v25 = vmul.f32 %v3786_v23, %v303_v24 }
 0x1cd   :  { %307 = vrot.lane.b32.xlu0 %v305_v25, %s4149_s3 }
 0x23f   :  { %v308_v27 = vpop.permute.xlu0 %307 }
 0x240   :  { %v310_v28 = vadd.f32 %v308_v27, %v300_v26 }
 0x242   :  { %3787 = vtanh.f32 %v310_v28  ;;  %v407_v44 = vrot.slane %v310_v28, 6 }
 0x24c   :  { %v3788_v29 = vpop.eup %3787 }
 0x24d   :  { %313 = vrot.lane.b32.xlu1 %v3788_v29, %s4148_s7 }
 0x2bf   :  { %v314_v30 = vpop.permute.xlu1 %313 }
 0x2c0   :  { %v316_v31 = vmul.f32 %v3786_v23, %v314_v30 }
 0x2c2   :  { %318 = vrot.lane.b32.xlu1 %v316_v31, %s4149_s3 }
 0x334   :  { %v319_v32 = vpop.permute.xlu1 %318 }
 0x335   :  { %322 = vst.msk [vmem:[#allocation2] sm:$0x3] %vm321_vm2, %v319_v32  ;;  %3324 = vmatmul.mubr.msk.f32.vlgmr.msra.gmra.mrb[2].mxu0 %vm218_vm3, %v319_v32 }
 0x336   :  { %3621 = vmatpush3.bf16.msra.mxu0 %v4306_v5  ;;  %3345 = vmatprep.mubr.msk.f32.mxu0 %vm4146_vm0, %v4147_v1 }
 0x337   :  { %3622 = vmatprep.subr.bf16.mxu0 %v4145_v0 }
 0x33a   :  { %3624 = vmatpush3.bf16.msra.mxu0 %v4315_v10 }
 0x33b   :  { %3631 = vmatprep.subr.bf16.mxu0 %v4145_v0 }
 0x408   :  { %v391_v33 = vpop.f32.mrb[2].mxu0 }
 0x409   :  { %v396_v34 = vrot.slane %v391_v33, 6  ;;  %v3325_v35 = vpop.f32.mrb[3].mxu0 }
 0x40b   :  { %v398_v36 = vadd.f32 %v396_v34, %v4339_v15 }
 0x40d   :  { %3789 = vtanh.f32 %v398_v36  ;;  %v3108_v38 = vmul.f32 -1.442695, %v398_v36 }
 0x40f   :  { %3791 = vpow2.f32 %v3108_v38 }
 0x417   :  { %v3790_v37 = vpop.eup %3789 }
 0x418   :  { %411 = vrot.lane.b32.xlu0 %v3790_v37, %s4148_s7 }
 0x419   :  { %v3792_v39 = vpop.eup %3791 }
 0x41a   :  { %v402_v40 = vadd.f32 1.0, %v3792_v39 }
 0x41c   :  { %3793 = vrcp.f32 %v402_v40 }
 0x426   :  { %v3794_v41 = vpop.eup %3793 }
 0x427   :  { %v409_v45 = vmul.f32 %v3794_v41, %v407_v44 }
 0x48a   :  { %v412_v42 = vpop.permute.xlu0 %411 }
 0x48b   :  { %v414_v43 = vmul.f32 %v3794_v41, %v412_v42 }
 0x48d   :  { %416 = vrot.lane.b32.xlu1 %v414_v43, %s4149_s3 }
 0x4ff   :  { %v417_v46 = vpop.permute.xlu1 %416 }
 0x500   :  { %v419_v47 = vadd.f32 %v417_v46, %v409_v45 }
 0x502   :  { %3795 = vtanh.f32 %v419_v47  ;;  %v519_v2 = vrot.slane %v419_v47, 6 }
 0x50c   :  { %v3796_v48 = vpop.eup %3795 }
 0x50d   :  { %422 = vrot.lane.b32.xlu0 %v3796_v48, %s4148_s7 }
 0x57f   :  { %v423_v49 = vpop.permute.xlu0 %422 }
 0x580   :  { %v4358_v50 = vmul.f32 %v3794_v41, %v423_v49 }
 0x582   :  { %v432_v51 = vrot.slane %v4358_v50, 2 }
 0x584   :  { %433 = vrot.lane.b32.xlu1 %v432_v51, %s4149_s3 }
 0x5f6   :  { %v434_v52 = vpop.permute.xlu1 %433 }
 0x5f7   :  { %3335 = vmatmul.mubr.msk.f32.vlgmr.msra.gmra.mrb[2].mxu1 %vm218_vm3, %v434_v52 }
 0x5f8   :  { %3627 = vmatpush3.bf16.msra.mxu1 %v4306_v5  ;;  %3356 = vmatprep.mubr.msk.f32.mxu1 %vm4146_vm0, %v4147_v1 }
 0x5f9   :  { %3628 = vmatprep.subr.bf16.mxu1 %v4145_v0 }
 0x5fc   :  { %3630 = vmatpush3.bf16.msra.mxu1 %v4315_v10 }
 0x5fd   :  { %3637 = vmatprep.subr.bf16.mxu1 %v4145_v0 }
 0x6ca   :  { %v503_v53 = vpop.f32.mrb[2].mxu1 }
 0x6cb   :  { %v508_v54 = vrot.slane %v503_v53, 4  ;;  %v3336_v55 = vpop.f32.mrb[3].mxu1 }
 0x6cd   :  { %v510_v56 = vadd.f32 %v508_v54, %v4339_v15 }
 0x6cf   :  { %3797 = vtanh.f32 %v510_v56  ;;  %v3110_v58 = vmul.f32 -1.442695, %v510_v56 }
 0x6d1   :  { %3799 = vpow2.f32 %v3110_v58 }
 0x6d9   :  { %v3798_v57 = vpop.eup %3797 }
 0x6da   :  { %523 = vrot.lane.b32.xlu0 %v3798_v57, %s4148_s7 }
 0x6db   :  { %v3800_v59 = vpop.eup %3799 }
 0x6dc   :  { %v514_v60 = vadd.f32 1.0, %v3800_v59 }
 0x6de   :  { %3801 = vrcp.f32 %v514_v60 }
 0x6e8   :  { %v3802_v61 = vpop.eup %3801 }
 0x6e9   :  { %v521_v3 = vmul.f32 %v3802_v61, %v519_v2 }
 0x74c   :  { %v524_v62 = vpop.permute.xlu0 %523 }
 0x74d   :  { %v526_v63 = vmul.f32 %v3802_v61, %v524_v62 }
 0x74f   :  { %528 = vrot.lane.b32.xlu1 %v526_v63, %s4149_s3 }
 0x7c1   :  { %v529_v4 = vpop.permute.xlu1 %528 }
 0x7c2   :  { %v531_v6 = vadd.f32 %v529_v4, %v521_v3 }
 0x7c4   :  { %3803 = vtanh.f32 %v531_v6  ;;  %v631_v26 = vrot.slane %v531_v6, 6 }
 0x7ce   :  { %v3804_v7 = vpop.eup %3803 }
 0x7cf   :  { %534 = vrot.lane.b32.xlu0 %v3804_v7, %s4148_s7 }
 0x841   :  { %v535_v8 = vpop.permute.xlu0 %534 }
 0x842   :  { %v4373_v9 = vmul.f32 %v3802_v61, %v535_v8 }
 0x844   :  { %v544_v11 = vrot.slane %v4373_v9, 4 }
 0x846   :  { %545 = vrot.lane.b32.xlu1 %v544_v11, %s4149_s3 }
 0x8b8   :  { %v546_v12 = vpop.permute.xlu1 %545 }
 0x8b9   :  { %3346 = vmatmul.mubr.msk.f32.vlgmr.msra.gmra.mrb[4].mxu0 %vm218_vm3, %v546_v12 }
 0x8ba   :  { %3633 = vmatpush3.bf16.msra.mxu0 %v4306_v5  ;;  %3367 = vmatprep.mubr.msk.f32.mxu0 %vm4146_vm0, %v4147_v1 }
 0x8bb   :  { %3634 = vmatprep.subr.bf16.mxu0 %v4145_v0 }
 0x8be   :  { %3636 = vmatpush3.bf16.msra.mxu0 %v4315_v10 }
 0x8bf   :  { %3643 = vmatprep.subr.bf16.mxu0 %v4145_v0 }
 0x98c   :  { %v615_v14 = vpop.f32.mrb[4].mxu0 }
 0x98d   :  { %v620_v16 = vrot.slane %v615_v14, 2  ;;  %v3347_v17 = vpop.f32.mrb[5].mxu0 }
 0x98f   :  { %v622_v18 = vadd.f32 %v620_v16, %v4339_v15 }
 0x991   :  { %3805 = vtanh.f32 %v622_v18  ;;  %v3112_v20 = vmul.f32 -1.442695, %v622_v18 }
 0x993   :  { %3807 = vpow2.f32 %v3112_v20 }
 0x99b   :  { %v3806_v19 = vpop.eup %3805 }
 0x99c   :  { %635 = vrot.lane.b32.xlu0 %v3806_v19, %s4148_s7 }
 0x99d   :  { %v3808_v21 = vpop.eup %3807 }
 0x99e   :  { %v626_v22 = vadd.f32 1.0, %v3808_v21 }
 0x9a0   :  { %3809 = vrcp.f32 %v626_v22 }
 0x9aa   :  { %v3810_v23 = vpop.eup %3809 }
 0x9ab   :  { %v633_v27 = vmul.f32 %v3810_v23, %v631_v26 }
 0xa0e   :  { %v636_v24 = vpop.permute.xlu0 %635 }
 0xa0f   :  { %v638_v25 = vmul.f32 %v3810_v23, %v636_v24 }
 0xa11   :  { %640 = vrot.lane.b32.xlu1 %v638_v25, %s4149_s3 }
 0xa83   :  { %v641_v28 = vpop.permute.xlu1 %640 }
 0xa84   :  { %v643_v29 = vadd.f32 %v641_v28, %v633_v27 }
 0xa86   :  { %3811 = vtanh.f32 %v643_v29  ;;  %v740_v44 = vrot.slane %v643_v29, 6 }
 0xa90   :  { %v3812_v15 = vpop.eup %3811 }
 0xa91   :  { %646 = vrot.lane.b32.xlu0 %v3812_v15, %s4148_s7 }
 0xb03   :  { %v647_v30 = vpop.permute.xlu0 %646 }
 0xb04   :  { %v4388_v31 = vmul.f32 %v3810_v23, %v647_v30 }
 0xb06   :  { %v656_v32 = vrot.slane %v4388_v31, 6 }
 0xb08   :  { %657 = vrot.lane.b32.xlu1 %v656_v32, %s4149_s3 }
 0xb7a   :  { %v658_v33 = vpop.permute.xlu1 %657 }
 0xb7b   :  { %3357 = vmatmul.mubr.msk.f32.vlgmr.msra.gmra.mrb[4].mxu1 %vm218_vm3, %v658_v33 }
 0xb7c   :  { %3639 = vmatpush3.bf16.msra.mxu1 %v4306_v5  ;;  %3378 = vmatprep.mubr.msk.f32.mxu1 %vm4146_vm0, %v4147_v1 }
 0xb7d   :  { %3640 = vmatprep.subr.bf16.mxu1 %v4145_v0 }
 0xb80   :  { %3642 = vmatpush3.bf16.msra.mxu1 %v4315_v10 }
 0xc4e   :  { %v727_v34 = vpop.f32.mrb[4].mxu1 }
 0xc4f   :  { %v731_v35 = vadd.f32 %v727_v34, %v4337_v13  ;;  %v3358_v36 = vpop.f32.mrb[5].mxu1 }
 0xc51   :  { %3813 = vtanh.f32 %v731_v35  ;;  %v3114_v38 = vmul.f32 -1.442695, %v731_v35 }
 0xc53   :  { %3815 = vpow2.f32 %v3114_v38 }
 0xc5b   :  { %v3814_v37 = vpop.eup %3813 }
 0xc5c   :  { %744 = vrot.lane.b32.xlu0 %v3814_v37, %s4148_s7 }
 0xc5d   :  { %v3816_v39 = vpop.eup %3815 }
 0xc5e   :  { %v735_v40 = vadd.f32 1.0, %v3816_v39 }
 0xc60   :  { %3817 = vrcp.f32 %v735_v40 }
 0xc6a   :  { %v3818_v41 = vpop.eup %3817 }
 0xc6b   :  { %v742_v45 = vmul.f32 %v3818_v41, %v740_v44 }
 0xcce   :  { %v745_v42 = vpop.permute.xlu0 %744 }
 0xccf   :  { %v747_v43 = vmul.f32 %v3818_v41, %v745_v42 }
 0xcd1   :  { %749 = vrot.lane.b32.xlu1 %v747_v43, %s4149_s3 }
 0xd43   :  { %v750_v46 = vpop.permute.xlu1 %749 }
 0xd44   :  { %v752_v47 = vadd.f32 %v750_v46, %v742_v45 }
 0xd46   :  { %3819 = vtanh.f32 %v752_v47 }
 0xd50   :  { %v3820_v48 = vpop.eup %3819 }
 0xd51   :  { %755 = vrot.lane.b32.xlu0 %v3820_v48, %s4148_s7 }
 0xdc3   :  { %v756_v49 = vpop.permute.xlu0 %755 }
 0xdc4   :  { %v758_v51 = vmul.f32 %v3818_v41, %v756_v49 }
 0xdc6   :  { %760 = vrot.lane.b32.xlu1 %v758_v51, %s4149_s3 }
 0xe38   :  { %v761_v52 = vpop.permute.xlu1 %760 }
 0xe39   :  { %763 = vst.msk [vmem:[#allocation2 + $0x8] sm:$0x3] %vm321_vm2, %v761_v52  ;;  %3368 = vmatmul.mubr.msk.f32.vlgmr.msra.gmra.mrb[6].mxu0 %vm218_vm3, %v761_v52  ;;  %v1097_v52 = vld [vmem:[%s4728_s4 + $0x8] sm:$0xff] }
 0xe3a   :  { %3645 = vmatpush3.bf16.msra.mxu0 %v4306_v5  ;;  %3389 = vmatprep.mubr.msk.f32.mxu0 %vm4146_vm0, %v4147_v1 }
 0xe3b   :  { %3646 = vmatprep.subr.bf16.mxu0 %v4145_v0 }
 0xe3e   :  { %3648 = vmatpush3.bf16.msra.mxu0 %v4315_v10  ;;  %v848_v10 = vrot.slane %v752_v47, 6 }
 0xe3f   :  { %3657 = vmatprep.subr.bf16.mxu0 %v4145_v0 }
 0xf0c   :  { %v832_v53 = vpop.f32.mrb[6].mxu0 }
 0xf0d   :  { %v837_v54 = vrot.slane %v832_v53, 6  ;;  %v3369_v55 = vpop.f32.mrb[7].mxu0 }
 0xf0e   :  { %v1189_v55 = vld [vmem:[#allocation8 + $0x8] sm:$0xff] }
 0xf0f   :  { %v839_v56 = vadd.f32 %v837_v54, %v4337_v13  ;;  %v1188_v54 = vld [vmem:[#allocation8] sm:$0xff] }
 0xf11   :  { %3821 = vtanh.f32 %v839_v56  ;;  %v3116_v58 = vmul.f32 -1.442695, %v839_v56  ;;  %v1098_v56 = vld [vmem:[%s4728_s4 + $0x10] sm:$0xff] }
 0xf13   :  { %3823 = vpow2.f32 %v3116_v58  ;;  %v1190_v58 = vld [vmem:[#allocation8 + $0x10] sm:$0xff] }
 0xf1b   :  { %v3822_v57 = vpop.eup %3821 }
 0xf1c   :  { %852 = vrot.lane.b32.xlu0 %v3822_v57, %s4148_s7  ;;  %v1099_v57 = vld [vmem:[%s4728_s4 + $0x18] sm:$0xff] }
 0xf1d   :  { %v3824_v5 = vpop.eup %3823 }
 0xf1e   :  { %v843_v59 = vadd.f32 1.0, %v3824_v5  ;;  %v1191_v5 = vld [vmem:[#allocation8 + $0x18] sm:$0xff] }
 0xf20   :  { %3825 = vrcp.f32 %v843_v59  ;;  %v3653_v59 = vpack.c.bf16 %v1099_v57, %v1098_v56 }
 0xf2a   :  { %v3826_v60 = vpop.eup %3825 }
 0xf2b   :  { %v850_v63 = vmul.f32 %v3826_v60, %v848_v10 }
 0xf8e   :  { %v853_v61 = vpop.permute.xlu0 %852 }
 0xf8f   :  { %v855_v62 = vmul.f32 %v3826_v60, %v853_v61 }
 0xf91   :  { %857 = vrot.lane.b32.xlu1 %v855_v62, %s4149_s3 }
0x1003   :  { %v858_v2 = vpop.permute.xlu1 %857 }
0x1004   :  { %v860_v3 = vadd.f32 %v858_v2, %v850_v63 }
0x1006   :  { %3827 = vtanh.f32 %v860_v3  ;;  %v959_v25 = vrot.slane %v860_v3, 6 }
0x1010   :  { %v3828_v4 = vpop.eup %3827 }
0x1011   :  { %863 = vrot.lane.b32.xlu0 %v3828_v4, %s4148_s7 }
0x1083   :  { %v864_v6 = vpop.permute.xlu0 %863 }
0x1084   :  { %v4415_v7 = vmul.f32 %v3826_v60, %v864_v6  ;;  %v4459_v60 = vpack.c.bf16 %v1191_v5, %v1190_v58 }
0x1086   :  { %v872_v8 = vrot.slane %v4415_v7, 2 }
0x1088   :  { %873 = vrot.lane.b32.xlu1 %v872_v8, %s4149_s3  ;;  %v3121_v8 = vld [vmem:[%s4730_s6] ss:$0 sm:$0xff] }
0x10fa   :  { %v874_v11 = vpop.permute.xlu1 %873 }
0x10fb   :  { %3379 = vmatmul.mubr.msk.f32.vlgmr.msra.gmra.mrb[6].mxu1 %vm218_vm3, %v874_v11 }
0x11ce   :  { %v943_v12 = vpop.f32.mrb[6].mxu1 }
0x11cf   :  { %v948_v14 = vrot.slane %v943_v12, 4  ;;  %v3380_v16 = vpop.f32.mrb[7].mxu1 }
0x11d1   :  { %v950_v17 = vadd.f32 %v948_v14, %v4337_v13 }
0x11d3   :  { %3829 = vtanh.f32 %v950_v17  ;;  %v3118_v19 = vmul.f32 -1.442695, %v950_v17 }
0x11d5   :  { %3831 = vpow2.f32 %v3118_v19 }
0x11dd   :  { %v3830_v18 = vpop.eup %3829 }
0x11de   :  { %963 = vrot.lane.b32.xlu0 %v3830_v18, %s4148_s7 }
0x11df   :  { %v3832_v20 = vpop.eup %3831 }
0x11e0   :  { %v954_v21 = vadd.f32 1.0, %v3832_v20 }
0x11e2   :  { %3833 = vrcp.f32 %v954_v21 }
0x11ec   :  { %v3834_v22 = vpop.eup %3833 }
0x11ed   :  { %v961_v26 = vmul.f32 %v3834_v22, %v959_v25 }
0x1250   :  { %v964_v23 = vpop.permute.xlu0 %963 }
0x1251   :  { %v966_v24 = vmul.f32 %v3834_v22, %v964_v23 }
0x1253   :  { %968 = vrot.lane.b32.xlu1 %v966_v24, %s4149_s3 }
0x12c5   :  { %v969_v27 = vpop.permute.xlu1 %968 }
0x12c6   :  { %v971_v28 = vadd.f32 %v969_v27, %v961_v26 }
0x12c8   :  { %3835 = vtanh.f32 %v971_v28 }
0x12d2   :  { %v3836_v29 = vpop.eup %3835 }
0x12d3   :  { %974 = vrot.lane.b32.xlu0 %v3836_v29, %s4148_s7 }
0x1345   :  { %v975_v15 = vpop.permute.xlu0 %974 }
0x1346   :  { %v977_v30 = vmul.f32 %v3834_v22, %v975_v15 }
0x1348   :  { %v983_v32 = vrot.slane %v977_v30, 4 }
0x134a   :  { %984 = vrot.lane.b32.xlu1 %v983_v32, %s4149_s3 }
0x13bc   :  { %v985_v33 = vpop.permute.xlu1 %984 }
0x13bd   :  { %3390 = vmatmul.mubr.msk.f32.vlgmr.msra.gmra.mrb[8].mxu0 %vm218_vm3, %v985_v33 }
0x13be   :  { %3411 = vmatprep.mubr.msk.f32.mxu0 %vm4146_vm0, %v4147_v1 }
0x1490   :  { %v1054_v34 = vpop.f32.mrb[8].mxu0 }
0x1491   :  { %v1059_v35 = vrot.slane %v1054_v34, 2  ;;  %v3391_v36 = vpop.f32.mrb[9].mxu0 }
0x1493   :  { %v1061_v37 = vadd.f32 %v1059_v35, %v4337_v13  ;;  %v1070_v13 = vrot.slane %v971_v28, 6 }
0x1495   :  { %3837 = vtanh.f32 %v1061_v37  ;;  %v3120_v39 = vmul.f32 -1.442695, %v1061_v37 }
0x1497   :  { %3839 = vpow2.f32 %v3120_v39 }
0x149f   :  { %v3838_v38 = vpop.eup %3837 }
0x14a0   :  { %1074 = vrot.lane.b32.xlu0 %v3838_v38, %s4148_s7 }
0x14a1   :  { %v3840_v40 = vpop.eup %3839 }
0x14a2   :  { %v1065_v41 = vadd.f32 1.0, %v3840_v40 }
0x14a4   :  { %3841 = vrcp.f32 %v1065_v41 }
0x14ae   :  { %v3842_v42 = vpop.eup %3841 }
0x14af   :  { %v1072_v45 = vmul.f32 %v3842_v42, %v1070_v13 }
0x1512   :  { %v1075_v43 = vpop.permute.xlu0 %1074 }
0x1513   :  { %v1077_v44 = vmul.f32 %v3842_v42, %v1075_v43 }
0x1515   :  { %1079 = vrot.lane.b32.xlu1 %v1077_v44, %s4149_s3 }
0x1519   :  { %427 = vrot.lane.b32.xlu1 %v4358_v50, %s4149_s3 }
0x151d   :  { %651 = vrot.lane.b32.xlu1 %v4388_v31, %s4149_s3  ;;  %v1096_v31 = vld [vmem:[%s4728_s4] sm:$0xff] }
0x151e   :  { %v3649_v53 = vpack.c.bf16 %v1097_v52, %v1096_v31 }
0x1520   :  { %3650 = vmatprep.subr.bf16.mxu1 %v3649_v53 }
0x1521   :  { %979 = vrot.lane.b32.xlu1 %v977_v30, %s4149_s3  ;;  %3652 = vmatpush3.bf16.msra.mxu1 %v3649_v53 }
0x1522   :  { %3654 = vmatprep.subr.bf16.mxu1 %v3653_v59 }
0x1525   :  { %3656 = vmatpush3.bf16.msra.mxu1 %v3653_v59 }
0x1526   :  { %3663 = vmatprep.subr.bf16.mxu1 %v4145_v0 }
0x1587   :  { %v1080_v46 = vpop.permute.xlu1 %1079 }
0x1588   :  { %v1082_v47 = vadd.f32 %v1080_v46, %v1072_v45 }
0x158a   :  { %3843 = vtanh.f32 %v1082_v47 }
0x158b   :  { %v428_v48 = vpop.permute.xlu1 %427 }
0x158c   :  { %431 = vst.msk [vmem:[#allocation2] sm:$0xc] %vm430_vm4, %v428_v48 }
0x158f   :  { %v652_v49 = vpop.permute.xlu1 %651 }
0x1590   :  { %655 = vst.msk [vmem:[#allocation2] sm:$0xc0] %vm654_vm5, %v652_v49 }
0x1593   :  { %v980_v50 = vpop.permute.xlu1 %979 }
0x1594   :  { %v3844_v51 = vpop.eup %3843  ;;  %982 = vst.msk [vmem:[#allocation2 + $0x8] sm:$0x30] %vm542_vm6, %v980_v50 }
0x1595   :  { %1085 = vrot.lane.b32.xlu0 %v3844_v51, %s4148_s7 }
0x1599   :  { %539 = vrot.lane.b32.xlu0 %v4373_v9, %s4149_s3  ;;  %v4453_v9 = vpack.c.bf16 %v1189_v55, %v1188_v54 }
0x159b   :  { %3659 = vmatpush3.bf16.msra.mxu0 %v4453_v9 }
0x159c   :  { %3660 = vmatprep.subr.bf16.mxu0 %v4145_v0 }
0x159d   :  { %868 = vrot.lane.b32.xlu0 %v4415_v7, %s4149_s3 }
0x159f   :  { %3662 = vmatpush3.bf16.msra.mxu0 %v4459_v60 }
0x15a0   :  { %3669 = vmatprep.subr.bf16.mxu0 %v4145_v0 }
0x15a2   :  { %3412 = vmatmul.mubr.f32.vlgmr.msra.gmra.mrb[10].mxu0 %v4147_v1 }
0x15a3   :  { %3671 = vmatpush3.bf16.msra.mxu0 %v4453_v9  ;;  %3433 = vmatprep.mubr.msk.f32.mxu0 %vm4146_vm0, %v4147_v1 }
0x15a4   :  { %3672 = vmatprep.subr.bf16.mxu0 %v4145_v0 }
0x15a7   :  { %3674 = vmatpush3.bf16.msra.mxu0 %v4459_v60 }
0x15a8   :  { %3681 = vmatprep.subr.bf16.mxu0 %v4145_v0 }
0x1607   :  { %v1086_v61 = vpop.permute.xlu0 %1085 }
0x1608   :  { %v1088_v62 = vmul.f32 %v3842_v42, %v1086_v61 }
0x160a   :  { %1090 = vrot.lane.b32.xlu0 %v1088_v62, %s4149_s3 }
0x160b   :  { %v540_v10 = vpop.permute.xlu0 %539 }
0x160c   :  { %543 = vst.msk [vmem:[#allocation2] sm:$0x30] %vm542_vm6, %v540_v10 }
0x160f   :  { %v869_v63 = vpop.permute.xlu0 %868 }
0x1610   :  { %871 = vst.msk [vmem:[#allocation2 + $0x8] sm:$0xc] %vm430_vm4, %v869_v63 }
0x1613   :  { %v1094_v2 = vld [vmem:[#allocation2] sm:$0xff] }
0x1614   :  { %3400 = vmatprep.mubr.msk.f32.mxu1 %vm218_vm3, %v1094_v2 }
0x1675   :  { %v1258_v6 = vpop.f32.mrb[10].mxu0 }
0x1676   :  { %v3413_v7 = vpop.f32.mrb[11].mxu0 }
0x167c   :  { %v1091_v3 = vpop.permute.xlu0 %1090 }
0x167d   :  { %1093 = vst.msk [vmem:[#allocation2 + $0x8] sm:$0xc0] %vm654_vm5, %v1091_v3 }
0x1684   :  { %v1095_v4 = vld [vmem:[#allocation2 + $0x8] sm:$0xff] }
0x1685   :  { %3401 = vmatmul.mubr.msk.f32.vlgmr.msra.gmra.mrb[8].mxu1 %vm218_vm3, %v1095_v4 }
0x1686   :  { %3665 = vmatpush3.bf16.msra.mxu1 %v4453_v9  ;;  %3422 = vmatprep.mubr.msk.f32.mxu1 %vm4146_vm0, %v4147_v1 }
0x1687   :  { %3666 = vmatprep.subr.bf16.mxu1 %v4145_v0 }
0x168a   :  { %3668 = vmatpush3.bf16.msra.mxu1 %v4459_v60 }
0x168b   :  { %3675 = vmatprep.subr.bf16.mxu1 %v4145_v0 }
0x1758   :  { %v3402_v11 = vpop.f32.mrb[8].mxu1 }
0x1759   :  { %v4487_v12 = vadd.f32 %v3402_v11, %v3121_v8  ;;  %v1179_v14 = vpop.f32.mrb[9].mxu1 }
0x175a   :  { %v4489_v16 = vadd.f32 %v3121_v8, %v1179_v14 }
0x175c   :  { %v1262_v17 = vadd.f32 %v1258_v6, %v4489_v16 }
0x175e   :  { %3845 = vtanh.f32 %v1262_v17  ;;  %v3124_v19 = vmul.f32 -1.442695, %v1262_v17 }
0x1760   :  { %3847 = vpow2.f32 %v3124_v19 }
0x1768   :  { %v3846_v18 = vpop.eup %3845 }
0x1769   :  { %1272 = vrot.lane.b32.xlu1 %v3846_v18, %s4148_s7 }
0x176a   :  { %v3848_v20 = vpop.eup %3847 }
0x176b   :  { %v1266_v21 = vadd.f32 1.0, %v3848_v20 }
0x176d   :  { %3849 = vrcp.f32 %v1266_v21 }
0x1777   :  { %v3850_v22 = vpop.eup %3849 }
0x1778   :  { %v1270_v25 = vmul.f32 0.0, %v3850_v22 }
0x17db   :  { %v1273_v23 = vpop.permute.xlu1 %1272 }
0x17dc   :  { %v1275_v24 = vmul.f32 %v3850_v22, %v1273_v23 }
0x17de   :  { %1277 = vrot.lane.b32.xlu0 %v1275_v24, %s4149_s3 }
0x1850   :  { %v1278_v26 = vpop.permute.xlu0 %1277 }
0x1851   :  { %v1280_v27 = vadd.f32 %v1278_v26, %v1270_v25 }
0x1853   :  { %3851 = vtanh.f32 %v1280_v27  ;;  %v1376_v43 = vrot.slane %v1280_v27, 6 }
0x185d   :  { %v3852_v28 = vpop.eup %3851 }
0x185e   :  { %1283 = vrot.lane.b32.xlu1 %v3852_v28, %s4148_s7 }
0x18d0   :  { %v1284_v29 = vpop.permute.xlu1 %1283 }
0x18d1   :  { %v1286_v15 = vmul.f32 %v3850_v22, %v1284_v29 }
0x18d3   :  { %1288 = vrot.lane.b32.xlu0 %v1286_v15, %s4149_s3 }
0x1945   :  { %v1289_v30 = vpop.permute.xlu0 %1288 }
0x1946   :  { %1291 = vst.msk [vmem:[#allocation2] sm:$0x3] %vm321_vm2, %v1289_v30  ;;  %3423 = vmatmul.mubr.msk.f32.vlgmr.msra.gmra.mrb[10].mxu1 %vm218_vm3, %v1289_v30 }
0x1947   :  { %3677 = vmatpush3.bf16.msra.mxu1 %v4453_v9  ;;  %3444 = vmatprep.mubr.msk.f32.mxu1 %vm4146_vm0, %v4147_v1 }
0x1948   :  { %3678 = vmatprep.subr.bf16.mxu1 %v4145_v0 }
0x194b   :  { %3680 = vmatpush3.bf16.msra.mxu1 %v4459_v60 }
0x194c   :  { %3687 = vmatprep.subr.bf16.mxu1 %v4145_v0 }
0x1a19   :  { %v1360_v32 = vpop.f32.mrb[10].mxu1 }
0x1a1a   :  { %v1365_v33 = vrot.slane %v1360_v32, 6  ;;  %v3424_v34 = vpop.f32.mrb[11].mxu1 }
0x1a1c   :  { %v1367_v35 = vadd.f32 %v1365_v33, %v4489_v16 }
0x1a1e   :  { %3853 = vtanh.f32 %v1367_v35  ;;  %v3126_v37 = vmul.f32 -1.442695, %v1367_v35 }
0x1a20   :  { %3855 = vpow2.f32 %v3126_v37 }
0x1a28   :  { %v3854_v36 = vpop.eup %3853 }
0x1a29   :  { %1380 = vrot.lane.b32.xlu1 %v3854_v36, %s4148_s7 }
0x1a2a   :  { %v3856_v38 = vpop.eup %3855 }
0x1a2b   :  { %v1371_v39 = vadd.f32 1.0, %v3856_v38 }
0x1a2d   :  { %3857 = vrcp.f32 %v1371_v39 }
0x1a37   :  { %v3858_v40 = vpop.eup %3857 }
0x1a38   :  { %v1378_v44 = vmul.f32 %v3858_v40, %v1376_v43 }
0x1a9b   :  { %v1381_v41 = vpop.permute.xlu1 %1380 }
0x1a9c   :  { %v1383_v42 = vmul.f32 %v3858_v40, %v1381_v41 }
0x1a9e   :  { %1385 = vrot.lane.b32.xlu0 %v1383_v42, %s4149_s3 }
0x1b10   :  { %v1386_v13 = vpop.permute.xlu0 %1385 }
0x1b11   :  { %v1388_v45 = vadd.f32 %v1386_v13, %v1378_v44 }
0x1b13   :  { %3859 = vtanh.f32 %v1388_v45  ;;  %v1487_v61 = vrot.slane %v1388_v45, 6 }
0x1b1d   :  { %v3860_v46 = vpop.eup %3859 }
0x1b1e   :  { %1391 = vrot.lane.b32.xlu1 %v3860_v46, %s4148_s7 }
0x1b90   :  { %v1392_v47 = vpop.permute.xlu1 %1391 }
0x1b91   :  { %v4508_v48 = vmul.f32 %v3858_v40, %v1392_v47 }
0x1b93   :  { %v1400_v49 = vrot.slane %v4508_v48, 2 }
0x1b95   :  { %1401 = vrot.lane.b32.xlu0 %v1400_v49, %s4149_s3 }
0x1c07   :  { %v1402_v50 = vpop.permute.xlu0 %1401 }
0x1c08   :  { %3434 = vmatmul.mubr.msk.f32.vlgmr.msra.gmra.mrb[12].mxu0 %vm218_vm3, %v1402_v50 }
0x1c09   :  { %3683 = vmatpush3.bf16.msra.mxu0 %v4453_v9  ;;  %3455 = vmatprep.mubr.msk.f32.mxu0 %vm4146_vm0, %v4147_v1 }
0x1c0a   :  { %3684 = vmatprep.subr.bf16.mxu0 %v4145_v0 }
0x1c0d   :  { %3686 = vmatpush3.bf16.msra.mxu0 %v4459_v60 }
0x1c0e   :  { %3693 = vmatprep.subr.bf16.mxu0 %v4145_v0 }
0x1cdb   :  { %v1471_v51 = vpop.f32.mrb[12].mxu0 }
0x1cdc   :  { %v1476_v31 = vrot.slane %v1471_v51, 4  ;;  %v3435_v52 = vpop.f32.mrb[13].mxu0 }
0x1cde   :  { %v1478_v53 = vadd.f32 %v1476_v31, %v4489_v16 }
0x1ce0   :  { %3861 = vtanh.f32 %v1478_v53  ;;  %v3128_v55 = vmul.f32 -1.442695, %v1478_v53 }
0x1ce2   :  { %3863 = vpow2.f32 %v3128_v55 }
0x1cea   :  { %v3862_v54 = vpop.eup %3861 }
0x1ceb   :  { %1491 = vrot.lane.b32.xlu1 %v3862_v54, %s4148_s7 }
0x1cec   :  { %v3864_v56 = vpop.eup %3863 }
0x1ced   :  { %v1482_v57 = vadd.f32 1.0, %v3864_v56 }
0x1cef   :  { %3865 = vrcp.f32 %v1482_v57 }
0x1cf9   :  { %v3866_v58 = vpop.eup %3865 }
0x1cfa   :  { %v1489_v62 = vmul.f32 %v3866_v58, %v1487_v61 }
0x1d5d   :  { %v1492_v5 = vpop.permute.xlu1 %1491 }
0x1d5e   :  { %v1494_v59 = vmul.f32 %v3866_v58, %v1492_v5 }
0x1d60   :  { %1496 = vrot.lane.b32.xlu0 %v1494_v59, %s4149_s3 }
0x1dd2   :  { %v1497_v10 = vpop.permute.xlu0 %1496 }
0x1dd3   :  { %v1499_v63 = vadd.f32 %v1497_v10, %v1489_v62 }
0x1dd5   :  { %3867 = vtanh.f32 %v1499_v63  ;;  %v1598_v25 = vrot.slane %v1499_v63, 6 }
0x1ddf   :  { %v3868_v2 = vpop.eup %3867 }
0x1de0   :  { %1502 = vrot.lane.b32.xlu1 %v3868_v2, %s4148_s7 }
0x1e52   :  { %v1503_v3 = vpop.permute.xlu1 %1502 }
0x1e53   :  { %v4523_v4 = vmul.f32 %v3866_v58, %v1503_v3 }
0x1e55   :  { %v1511_v6 = vrot.slane %v4523_v4, 4 }
0x1e57   :  { %1512 = vrot.lane.b32.xlu0 %v1511_v6, %s4149_s3 }
0x1ec9   :  { %v1513_v7 = vpop.permute.xlu0 %1512 }
0x1eca   :  { %3445 = vmatmul.mubr.msk.f32.vlgmr.msra.gmra.mrb[12].mxu1 %vm218_vm3, %v1513_v7 }
0x1ecb   :  { %3689 = vmatpush3.bf16.msra.mxu1 %v4453_v9  ;;  %3466 = vmatprep.mubr.msk.f32.mxu1 %vm4146_vm0, %v4147_v1 }
0x1ecc   :  { %3690 = vmatprep.subr.bf16.mxu1 %v4145_v0 }
0x1ecf   :  { %3692 = vmatpush3.bf16.msra.mxu1 %v4459_v60 }
0x1ed0   :  { %3699 = vmatprep.subr.bf16.mxu1 %v4145_v0 }
0x1f9d   :  { %v1582_v8 = vpop.f32.mrb[12].mxu1 }
0x1f9e   :  { %v1587_v11 = vrot.slane %v1582_v8, 2  ;;  %v3446_v14 = vpop.f32.mrb[13].mxu1 }
0x1fa0   :  { %v1589_v17 = vadd.f32 %v1587_v11, %v4489_v16 }
0x1fa2   :  { %3869 = vtanh.f32 %v1589_v17  ;;  %v3130_v19 = vmul.f32 -1.442695, %v1589_v17 }
0x1fa4   :  { %3871 = vpow2.f32 %v3130_v19 }
0x1fac   :  { %v3870_v18 = vpop.eup %3869 }
0x1fad   :  { %1602 = vrot.lane.b32.xlu1 %v3870_v18, %s4148_s7 }
0x1fae   :  { %v3872_v20 = vpop.eup %3871 }
0x1faf   :  { %v1593_v21 = vadd.f32 1.0, %v3872_v20 }
0x1fb1   :  { %3873 = vrcp.f32 %v1593_v21 }
0x1fbb   :  { %v3874_v22 = vpop.eup %3873 }
0x1fbc   :  { %v1600_v26 = vmul.f32 %v3874_v22, %v1598_v25 }
0x201f   :  { %v1603_v23 = vpop.permute.xlu1 %1602 }
0x2020   :  { %v1605_v24 = vmul.f32 %v3874_v22, %v1603_v23 }
0x2022   :  { %1607 = vrot.lane.b32.xlu0 %v1605_v24, %s4149_s3 }
0x2094   :  { %v1608_v27 = vpop.permute.xlu0 %1607 }
0x2095   :  { %v1610_v28 = vadd.f32 %v1608_v27, %v1600_v26 }
0x2097   :  { %3875 = vtanh.f32 %v1610_v28  ;;  %v1706_v43 = vrot.slane %v1610_v28, 6 }
0x20a1   :  { %v3876_v16 = vpop.eup %3875 }
0x20a2   :  { %1613 = vrot.lane.b32.xlu1 %v3876_v16, %s4148_s7 }
0x2114   :  { %v1614_v29 = vpop.permute.xlu1 %1613 }
0x2115   :  { %v4538_v15 = vmul.f32 %v3874_v22, %v1614_v29 }
0x2117   :  { %v1622_v30 = vrot.slane %v4538_v15, 6 }
0x2119   :  { %1623 = vrot.lane.b32.xlu0 %v1622_v30, %s4149_s3 }
0x218b   :  { %v1624_v32 = vpop.permute.xlu0 %1623 }
0x218c   :  { %3456 = vmatmul.mubr.msk.f32.vlgmr.msra.gmra.mrb[14].mxu0 %vm218_vm3, %v1624_v32 }
0x218d   :  { %3695 = vmatpush3.bf16.msra.mxu0 %v4453_v9  ;;  %3477 = vmatprep.mubr.msk.f32.mxu0 %vm4146_vm0, %v4147_v1 }
0x218e   :  { %3696 = vmatprep.subr.bf16.mxu0 %v4145_v0 }
0x2191   :  { %3698 = vmatpush3.bf16.msra.mxu0 %v4459_v60 }
0x225f   :  { %v1693_v33 = vpop.f32.mrb[14].mxu0 }
0x2260   :  { %v1697_v34 = vadd.f32 %v1693_v33, %v4487_v12  ;;  %v3457_v35 = vpop.f32.mrb[15].mxu0 }
0x2262   :  { %3877 = vtanh.f32 %v1697_v34  ;;  %v3132_v37 = vmul.f32 -1.442695, %v1697_v34 }
0x2264   :  { %3879 = vpow2.f32 %v3132_v37 }
0x226c   :  { %v3878_v36 = vpop.eup %3877 }
0x226d   :  { %1710 = vrot.lane.b32.xlu1 %v3878_v36, %s4148_s7 }
0x226e   :  { %v3880_v38 = vpop.eup %3879 }
0x226f   :  { %v1701_v39 = vadd.f32 1.0, %v3880_v38 }
0x2271   :  { %3881 = vrcp.f32 %v1701_v39 }
0x227b   :  { %v3882_v40 = vpop.eup %3881 }
0x227c   :  { %v1708_v44 = vmul.f32 %v3882_v40, %v1706_v43 }
0x22df   :  { %v1711_v41 = vpop.permute.xlu1 %1710 }
0x22e0   :  { %v1713_v42 = vmul.f32 %v3882_v40, %v1711_v41 }
0x22e2   :  { %1715 = vrot.lane.b32.xlu0 %v1713_v42, %s4149_s3 }
0x2354   :  { %v1716_v13 = vpop.permute.xlu0 %1715 }
0x2355   :  { %v1718_v45 = vadd.f32 %v1716_v13, %v1708_v44 }
0x2357   :  { %3883 = vtanh.f32 %v1718_v45 }
0x2361   :  { %v3884_v46 = vpop.eup %3883 }
0x2362   :  { %1721 = vrot.lane.b32.xlu1 %v3884_v46, %s4148_s7 }
0x23d4   :  { %v1722_v47 = vpop.permute.xlu1 %1721 }
0x23d5   :  { %v1724_v49 = vmul.f32 %v3882_v40, %v1722_v47 }
0x23d7   :  { %1726 = vrot.lane.b32.xlu0 %v1724_v49, %s4149_s3 }
0x2449   :  { %v1727_v50 = vpop.permute.xlu0 %1726 }
0x244a   :  { %1729 = vst.msk [vmem:[#allocation2 + $0x8] sm:$0x3] %vm321_vm2, %v1727_v50  ;;  %3467 = vmatmul.mubr.msk.f32.vlgmr.msra.gmra.mrb[14].mxu1 %vm218_vm3, %v1727_v50 }
0x244b   :  { %3701 = vmatpush3.bf16.msra.mxu1 %v4453_v9  ;;  %3488 = vmatprep.mubr.msk.f32.mxu1 %vm4146_vm0, %v4147_v1 }
0x244c   :  { %3702 = vmatprep.subr.bf16.mxu1 %v4145_v0 }
0x244f   :  { %3704 = vmatpush3.bf16.msra.mxu1 %v4459_v60  ;;  %v1814_v60 = vrot.slane %v1718_v45, 6 }
0x2450   :  { %3713 = vmatprep.subr.bf16.mxu1 %v4145_v0 }
0x251d   :  { %v1798_v51 = vpop.f32.mrb[14].mxu1 }
0x251e   :  { %v1803_v31 = vrot.slane %v1798_v51, 6  ;;  %v3468_v52 = vpop.f32.mrb[15].mxu1 }
0x251f   :  { %v2155_v52 = vld [vmem:[#allocation11 + $0x8] sm:$0xff] }
0x2520   :  { %v1805_v53 = vadd.f32 %v1803_v31, %v4487_v12  ;;  %v2154_v31 = vld [vmem:[#allocation11] sm:$0xff] }
0x2522   :  { %3885 = vtanh.f32 %v1805_v53  ;;  %v3134_v55 = vmul.f32 -1.442695, %v1805_v53  ;;  %v2064_v53 = vld [vmem:[#allocation9 + $0x10] sm:$0xff] }
0x2524   :  { %3887 = vpow2.f32 %v3134_v55  ;;  %v2065_v55 = vld [vmem:[#allocation9 + $0x18] sm:$0xff] }
0x252c   :  { %v3886_v54 = vpop.eup %3885 }
0x252d   :  { %1818 = vrot.lane.b32.xlu1 %v3886_v54, %s4148_s7  ;;  %v4594_v54 = vpack.c.bf16 %v2155_v52, %v2154_v31 }
0x252e   :  { %v3888_v9 = vpop.eup %3887 }
0x252f   :  { %v1809_v56 = vadd.f32 1.0, %v3888_v9  ;;  %v2156_v9 = vld [vmem:[#allocation11 + $0x10] sm:$0xff] }
0x2531   :  { %3889 = vrcp.f32 %v1809_v56  ;;  %v2157_v56 = vld [vmem:[#allocation11 + $0x18] sm:$0xff] }
0x253b   :  { %v3890_v57 = vpop.eup %3889 }
0x253c   :  { %v1816_v59 = vmul.f32 %v3890_v57, %v1814_v60 }
0x259f   :  { %v1819_v58 = vpop.permute.xlu1 %1818 }
0x25a0   :  { %v1821_v5 = vmul.f32 %v3890_v57, %v1819_v58 }
0x25a2   :  { %1823 = vrot.lane.b32.xlu0 %v1821_v5, %s4149_s3 }
0x2614   :  { %v1824_v61 = vpop.permute.xlu0 %1823 }
0x2615   :  { %v1826_v62 = vadd.f32 %v1824_v61, %v1816_v59 }
0x2617   :  { %3891 = vtanh.f32 %v1826_v62  ;;  %v1925_v24 = vrot.slane %v1826_v62, 6 }
0x2621   :  { %v3892_v10 = vpop.eup %3891 }
0x2622   :  { %1829 = vrot.lane.b32.xlu1 %v3892_v10, %s4148_s7 }
0x2694   :  { %v1830_v63 = vpop.permute.xlu1 %1829 }
0x2695   :  { %v4565_v2 = vmul.f32 %v3890_v57, %v1830_v63  ;;  %v3709_v57 = vpack.c.bf16 %v2065_v55, %v2064_v53 }
0x2697   :  { %v1838_v3 = vrot.slane %v4565_v2, 2 }
0x2699   :  { %1839 = vrot.lane.b32.xlu0 %v1838_v3, %s4149_s3  ;;  %v3139_v3 = vld [vmem:[%s4733_s9] ss:$0 sm:$0xff] }
0x270b   :  { %v1840_v6 = vpop.permute.xlu0 %1839 }
0x270c   :  { %3478 = vmatmul.mubr.msk.f32.vlgmr.msra.gmra.mrb[16].mxu0 %vm218_vm3, %v1840_v6 }
0x27df   :  { %v1909_v7 = vpop.f32.mrb[16].mxu0 }
0x27e0   :  { %v1914_v8 = vrot.slane %v1909_v7, 4  ;;  %v3479_v11 = vpop.f32.mrb[17].mxu0 }
0x27e2   :  { %v1916_v14 = vadd.f32 %v1914_v8, %v4487_v12 }
0x27e4   :  { %3893 = vtanh.f32 %v1916_v14  ;;  %v3136_v18 = vmul.f32 -1.442695, %v1916_v14 }
0x27e6   :  { %3895 = vpow2.f32 %v3136_v18 }
0x27ee   :  { %v3894_v17 = vpop.eup %3893 }
0x27ef   :  { %1929 = vrot.lane.b32.xlu1 %v3894_v17, %s4148_s7 }
0x27f0   :  { %v3896_v19 = vpop.eup %3895 }
0x27f1   :  { %v1920_v20 = vadd.f32 1.0, %v3896_v19 }
0x27f3   :  { %3897 = vrcp.f32 %v1920_v20 }
0x27fd   :  { %v3898_v21 = vpop.eup %3897 }
0x27fe   :  { %v1927_v25 = vmul.f32 %v3898_v21, %v1925_v24 }
0x2861   :  { %v1930_v22 = vpop.permute.xlu1 %1929 }
0x2862   :  { %v1932_v23 = vmul.f32 %v3898_v21, %v1930_v22 }
0x2864   :  { %1934 = vrot.lane.b32.xlu0 %v1932_v23, %s4149_s3 }
0x28d6   :  { %v1935_v26 = vpop.permute.xlu0 %1934 }
0x28d7   :  { %v1937_v27 = vadd.f32 %v1935_v26, %v1927_v25 }
0x28d9   :  { %3899 = vtanh.f32 %v1937_v27 }
0x28e3   :  { %v3900_v28 = vpop.eup %3899 }
0x28e4   :  { %1940 = vrot.lane.b32.xlu1 %v3900_v28, %s4148_s7 }
0x2956   :  { %v1941_v16 = vpop.permute.xlu1 %1940 }
0x2957   :  { %v1943_v29 = vmul.f32 %v3898_v21, %v1941_v16 }
0x2959   :  { %v1949_v30 = vrot.slane %v1943_v29, 4 }
0x295b   :  { %1950 = vrot.lane.b32.xlu0 %v1949_v30, %s4149_s3 }
0x29cd   :  { %v1951_v32 = vpop.permute.xlu0 %1950 }
0x29ce   :  { %3489 = vmatmul.mubr.msk.f32.vlgmr.msra.gmra.mrb[16].mxu1 %vm218_vm3, %v1951_v32 }
0x29cf   :  { %3510 = vmatprep.mubr.msk.f32.mxu1 %vm4146_vm0, %v4147_v1  ;;  %3715 = vmatpush3.bf16.msra.mxu1 %v4594_v54 }
0x29d0   :  { %3716 = vmatprep.subr.bf16.mxu1 %v4145_v0 }
0x2aa1   :  { %v2020_v33 = vpop.f32.mrb[16].mxu1 }
0x2aa2   :  { %v2025_v34 = vrot.slane %v2020_v33, 2  ;;  %v3490_v35 = vpop.f32.mrb[17].mxu1 }
0x2aa4   :  { %v2027_v36 = vadd.f32 %v2025_v34, %v4487_v12  ;;  %v2036_v12 = vrot.slane %v1937_v27, 6 }
0x2aa6   :  { %3901 = vtanh.f32 %v2027_v36  ;;  %v3138_v38 = vmul.f32 -1.442695, %v2027_v36 }
0x2aa8   :  { %3903 = vpow2.f32 %v3138_v38 }
0x2ab0   :  { %v3902_v37 = vpop.eup %3901 }
0x2ab1   :  { %2040 = vrot.lane.b32.xlu1 %v3902_v37, %s4148_s7 }
0x2ab2   :  { %v3904_v39 = vpop.eup %3903 }
0x2ab3   :  { %v2031_v40 = vadd.f32 1.0, %v3904_v39 }
0x2ab5   :  { %3905 = vrcp.f32 %v2031_v40 }
0x2abf   :  { %v3906_v41 = vpop.eup %3905 }
0x2ac0   :  { %v2038_v44 = vmul.f32 %v3906_v41, %v2036_v12 }
0x2b23   :  { %v2041_v42 = vpop.permute.xlu1 %2040 }
0x2b24   :  { %v2043_v43 = vmul.f32 %v3906_v41, %v2041_v42 }
0x2b26   :  { %2045 = vrot.lane.b32.xlu0 %v2043_v43, %s4149_s3 }
0x2b2a   :  { %1396 = vrot.lane.b32.xlu0 %v4508_v48, %s4149_s3  ;;  %v2062_v48 = vld [vmem:[#allocation9] sm:$0xff] }
0x2b2e   :  { %1618 = vrot.lane.b32.xlu0 %v4538_v15, %s4149_s3  ;;  %v2063_v15 = vld [vmem:[#allocation9 + $0x8] sm:$0xff] }
0x2b2f   :  { %v3705_v51 = vpack.c.bf16 %v2063_v15, %v2062_v48 }
0x2b31   :  { %3706 = vmatprep.subr.bf16.mxu0 %v3705_v51 }
0x2b32   :  { %1945 = vrot.lane.b32.xlu0 %v1943_v29, %s4149_s3  ;;  %3708 = vmatpush3.bf16.msra.mxu0 %v3705_v51 }
0x2b33   :  { %3710 = vmatprep.subr.bf16.mxu0 %v3709_v57 }
0x2b36   :  { %3712 = vmatpush3.bf16.msra.mxu0 %v3709_v57 }
0x2b37   :  { %3719 = vmatprep.subr.bf16.mxu0 %v4145_v0 }
0x2b98   :  { %v2046_v13 = vpop.permute.xlu0 %2045 }
0x2b99   :  { %v2048_v45 = vadd.f32 %v2046_v13, %v2038_v44 }
0x2b9b   :  { %3907 = vtanh.f32 %v2048_v45 }
0x2b9c   :  { %v1397_v46 = vpop.permute.xlu0 %1396 }
0x2b9d   :  { %1399 = vst.msk [vmem:[#allocation2] sm:$0xc] %vm430_vm4, %v1397_v46 }
0x2ba0   :  { %v1619_v47 = vpop.permute.xlu0 %1618 }
0x2ba1   :  { %1621 = vst.msk [vmem:[#allocation2] sm:$0xc0] %vm654_vm5, %v1619_v47 }
0x2ba4   :  { %v1946_v49 = vpop.permute.xlu0 %1945 }
0x2ba5   :  { %v3908_v50 = vpop.eup %3907  ;;  %1948 = vst.msk [vmem:[#allocation2 + $0x8] sm:$0x30] %vm542_vm6, %v1946_v49 }
0x2ba6   :  { %2051 = vrot.lane.b32.xlu1 %v3908_v50, %s4148_s7 }
0x2baa   :  { %1507 = vrot.lane.b32.xlu1 %v4523_v4, %s4149_s3  ;;  %v4597_v4 = vpack.c.bf16 %v2157_v56, %v2156_v9 }
0x2bac   :  { %3718 = vmatpush3.bf16.msra.mxu1 %v4597_v4 }
0x2bad   :  { %3725 = vmatprep.subr.bf16.mxu1 %v4145_v0 }
0x2bae   :  { %1834 = vrot.lane.b32.xlu1 %v4565_v2, %s4149_s3 }
0x2baf   :  { %3511 = vmatmul.mubr.f32.vlgmr.msra.gmra.mrb[18].mxu1 %v4147_v1 }
0x2bb0   :  { %3727 = vmatpush3.bf16.msra.mxu1 %v4594_v54  ;;  %3532 = vmatprep.mubr.msk.f32.mxu1 %vm4146_vm0, %v4147_v1 }
0x2bb1   :  { %3728 = vmatprep.subr.bf16.mxu1 %v4145_v0 }
0x2bb4   :  { %3730 = vmatpush3.bf16.msra.mxu1 %v4597_v4 }
0x2bb5   :  { %3737 = vmatprep.subr.bf16.mxu1 %v4145_v0 }
0x2c18   :  { %v2052_v58 = vpop.permute.xlu1 %2051 }
0x2c19   :  { %v2054_v5 = vmul.f32 %v3906_v41, %v2052_v58 }
0x2c1b   :  { %2056 = vrot.lane.b32.xlu1 %v2054_v5, %s4149_s3 }
0x2c1c   :  { %v1508_v60 = vpop.permute.xlu1 %1507 }
0x2c1d   :  { %1510 = vst.msk [vmem:[#allocation2] sm:$0x30] %vm542_vm6, %v1508_v60 }
0x2c20   :  { %v1835_v59 = vpop.permute.xlu1 %1834 }
0x2c21   :  { %1837 = vst.msk [vmem:[#allocation2 + $0x8] sm:$0xc] %vm430_vm4, %v1835_v59 }
0x2c24   :  { %v2060_v61 = vld [vmem:[#allocation2] sm:$0xff] }
0x2c25   :  { %3499 = vmatprep.mubr.msk.f32.mxu0 %vm218_vm3, %v2060_v61 }
0x2c82   :  { %v2224_v63 = vpop.f32.mrb[18].mxu1 }
0x2c83   :  { %v3512_v2 = vpop.f32.mrb[19].mxu1 }
0x2c8d   :  { %v2057_v62 = vpop.permute.xlu1 %2056 }
0x2c8e   :  { %2059 = vst.msk [vmem:[#allocation2 + $0x8] sm:$0xc0] %vm654_vm5, %v2057_v62 }
0x2c95   :  { %v2061_v10 = vld [vmem:[#allocation2 + $0x8] sm:$0xff] }
0x2c96   :  { %3500 = vmatmul.mubr.msk.f32.vlgmr.msra.gmra.mrb[18].mxu0 %vm218_vm3, %v2061_v10 }
0x2c97   :  { %3721 = vmatpush3.bf16.msra.mxu0 %v4594_v54  ;;  %3521 = vmatprep.mubr.msk.f32.mxu0 %vm4146_vm0, %v4147_v1 }
0x2c98   :  { %3722 = vmatprep.subr.bf16.mxu0 %v4145_v0 }
0x2c9b   :  { %3724 = vmatpush3.bf16.msra.mxu0 %v4597_v4 }
0x2c9c   :  { %3731 = vmatprep.subr.bf16.mxu0 %v4145_v0 }
0x2d69   :  { %v3501_v6 = vpop.f32.mrb[18].mxu0 }
0x2d6a   :  { %v4625_v7 = vadd.f32 %v3501_v6, %v3139_v3  ;;  %v2145_v8 = vpop.f32.mrb[19].mxu0 }
0x2d6b   :  { %v4627_v11 = vadd.f32 %v3139_v3, %v2145_v8 }
0x2d6d   :  { %v2228_v14 = vadd.f32 %v2224_v63, %v4627_v11 }
0x2d6f   :  { %3909 = vtanh.f32 %v2228_v14  ;;  %v3142_v18 = vmul.f32 -1.442695, %v2228_v14 }
0x2d71   :  { %3911 = vpow2.f32 %v3142_v18 }
0x2d79   :  { %v3910_v17 = vpop.eup %3909 }
0x2d7a   :  { %2238 = vrot.lane.b32.xlu0 %v3910_v17, %s4148_s7 }
0x2d7b   :  { %v3912_v19 = vpop.eup %3911 }
0x2d7c   :  { %v2232_v20 = vadd.f32 1.0, %v3912_v19 }
0x2d7e   :  { %3913 = vrcp.f32 %v2232_v20 }
0x2d88   :  { %v3914_v21 = vpop.eup %3913 }
0x2d89   :  { %v2236_v24 = vmul.f32 0.0, %v3914_v21 }
0x2dec   :  { %v2239_v22 = vpop.permute.xlu0 %2238 }
0x2ded   :  { %v2241_v23 = vmul.f32 %v3914_v21, %v2239_v22 }
0x2def   :  { %2243 = vrot.lane.b32.xlu1 %v2241_v23, %s4149_s3 }
0x2e61   :  { %v2244_v25 = vpop.permute.xlu1 %2243 }
0x2e62   :  { %v2246_v26 = vadd.f32 %v2244_v25, %v2236_v24 }
0x2e64   :  { %3915 = vtanh.f32 %v2246_v26  ;;  %v2340_v42 = vrot.slane %v2246_v26, 6 }
0x2e6e   :  { %v3916_v27 = vpop.eup %3915 }
0x2e6f   :  { %2249 = vrot.lane.b32.xlu0 %v3916_v27, %s4148_s7 }
0x2ee1   :  { %v2250_v28 = vpop.permute.xlu0 %2249 }
0x2ee2   :  { %v2252_v16 = vmul.f32 %v3914_v21, %v2250_v28 }
0x2ee4   :  { %2254 = vrot.lane.b32.xlu1 %v2252_v16, %s4149_s3 }
0x2f56   :  { %v2255_v29 = vpop.permute.xlu1 %2254 }
0x2f57   :  { %3522 = vmatmul.mubr.msk.f32.vlgmr.msra.gmra.mrb[20].mxu0 %vm218_vm3, %v2255_v29 }
0x2f58   :  { %3733 = vmatpush3.bf16.msra.mxu0 %v4594_v54  ;;  %3543 = vmatprep.mubr.msk.f32.mxu0 %vm4146_vm0, %v4147_v1 }
0x2f59   :  { %3734 = vmatprep.subr.bf16.mxu0 %v4145_v0 }
0x2f5c   :  { %3736 = vmatpush3.bf16.msra.mxu0 %v4597_v4 }
0x2f5d   :  { %3743 = vmatprep.subr.bf16.mxu0 %v4145_v0 }
0x302a   :  { %v2324_v30 = vpop.f32.mrb[20].mxu0 }
0x302b   :  { %v2329_v32 = vrot.slane %v2324_v30, 6  ;;  %v3523_v33 = vpop.f32.mrb[21].mxu0 }
0x302d   :  { %v2331_v34 = vadd.f32 %v2329_v32, %v4627_v11 }
0x302f   :  { %3917 = vtanh.f32 %v2331_v34  ;;  %v3144_v36 = vmul.f32 -1.442695, %v2331_v34 }
0x3031   :  { %3919 = vpow2.f32 %v3144_v36 }
0x3039   :  { %v3918_v35 = vpop.eup %3917 }
0x303a   :  { %2344 = vrot.lane.b32.xlu0 %v3918_v35, %s4148_s7 }
0x303b   :  { %v3920_v37 = vpop.eup %3919 }
0x303c   :  { %v2335_v38 = vadd.f32 1.0, %v3920_v37 }
0x303e   :  { %3921 = vrcp.f32 %v2335_v38 }
0x3048   :  { %v3922_v39 = vpop.eup %3921 }
0x3049   :  { %v2342_v43 = vmul.f32 %v3922_v39, %v2340_v42 }
0x30ac   :  { %v2345_v40 = vpop.permute.xlu0 %2344 }
0x30ad   :  { %v2347_v41 = vmul.f32 %v3922_v39, %v2345_v40 }
0x30af   :  { %2349 = vrot.lane.b32.xlu1 %v2347_v41, %s4149_s3 }
0x3121   :  { %v2350_v12 = vpop.permute.xlu1 %2349 }
0x3122   :  { %v2352_v44 = vadd.f32 %v2350_v12, %v2342_v43 }
0x3124   :  { %3923 = vtanh.f32 %v2352_v44  ;;  %v2447_v58 = vrot.slane %v2352_v44, 6 }
0x312e   :  { %v3924_v13 = vpop.eup %3923 }
0x312f   :  { %2355 = vrot.lane.b32.xlu0 %v3924_v13, %s4148_s7 }
0x31a1   :  { %v2356_v45 = vpop.permute.xlu0 %2355 }
0x31a2   :  { %v2358_v46 = vmul.f32 %v3922_v39, %v2356_v45 }
0x31a4   :  { %v2360_v47 = vrot.slane %v2358_v46, 2 }
0x31a6   :  { %2361 = vrot.lane.b32.xlu1 %v2360_v47, %s4149_s3 }
0x3218   :  { %v2362_v49 = vpop.permute.xlu1 %2361 }
0x3219   :  { %3533 = vmatmul.mubr.msk.f32.vlgmr.msra.gmra.mrb[20].mxu1 %vm218_vm3, %v2362_v49 }
0x321a   :  { %3739 = vmatpush3.bf16.msra.mxu1 %v4594_v54  ;;  %3554 = vmatprep.mubr.msk.f32.mxu1 %vm4146_vm0, %v4147_v1 }
0x321b   :  { %3740 = vmatprep.subr.bf16.mxu1 %v4145_v0 }
0x321e   :  { %3742 = vmatpush3.bf16.msra.mxu1 %v4597_v4 }
0x321f   :  { %3749 = vmatprep.subr.bf16.mxu1 %v4145_v0 }
0x32ec   :  { %v2431_v50 = vpop.f32.mrb[20].mxu1 }
0x32ed   :  { %v2436_v48 = vrot.slane %v2431_v50, 4  ;;  %v3534_v15 = vpop.f32.mrb[21].mxu1 }
0x32ef   :  { %v2438_v51 = vadd.f32 %v2436_v48, %v4627_v11 }
0x32f1   :  { %3925 = vtanh.f32 %v2438_v51  ;;  %v3146_v52 = vmul.f32 -1.442695, %v2438_v51 }
0x32f3   :  { %3927 = vpow2.f32 %v3146_v52 }
0x32fb   :  { %v3926_v31 = vpop.eup %3925 }
0x32fc   :  { %2451 = vrot.lane.b32.xlu0 %v3926_v31, %s4148_s7 }
0x32fd   :  { %v3928_v53 = vpop.eup %3927 }
0x32fe   :  { %v2442_v55 = vadd.f32 1.0, %v3928_v53 }
0x3300   :  { %3929 = vrcp.f32 %v2442_v55 }
0x330a   :  { %v3930_v9 = vpop.eup %3929 }
0x330b   :  { %v2449_v5 = vmul.f32 %v3930_v9, %v2447_v58 }
0x336e   :  { %v2452_v56 = vpop.permute.xlu0 %2451 }
0x336f   :  { %v2454_v57 = vmul.f32 %v3930_v9, %v2452_v56 }
0x3371   :  { %2456 = vrot.lane.b32.xlu1 %v2454_v57, %s4149_s3 }
0x33e3   :  { %v2457_v60 = vpop.permute.xlu1 %2456 }
0x33e4   :  { %v2459_v59 = vadd.f32 %v2457_v60, %v2449_v5 }
0x33e6   :  { %3931 = vtanh.f32 %v2459_v59  ;;  %v2554_v24 = vrot.slane %v2459_v59, 6 }
0x33f0   :  { %v3932_v61 = vpop.eup %3931 }
0x33f1   :  { %2462 = vrot.lane.b32.xlu0 %v3932_v61, %s4148_s7 }
0x3463   :  { %v2463_v62 = vpop.permute.xlu0 %2462 }
0x3464   :  { %v2465_v10 = vmul.f32 %v3930_v9, %v2463_v62 }
0x3466   :  { %v2467_v63 = vrot.slane %v2465_v10, 4 }
0x3468   :  { %2468 = vrot.lane.b32.xlu1 %v2467_v63, %s4149_s3 }
0x34da   :  { %v2469_v2 = vpop.permute.xlu1 %2468 }
0x34db   :  { %3544 = vmatmul.mubr.msk.f32.vlgmr.msra.gmra.mrb[22].mxu0 %vm218_vm3, %v2469_v2 }
0x34dc   :  { %3745 = vmatpush3.bf16.msra.mxu0 %v4594_v54  ;;  %3565 = vmatprep.mubr.msk.f32.mxu0 %vm4146_vm0, %v4147_v1 }
0x34dd   :  { %3746 = vmatprep.subr.bf16.mxu0 %v4145_v0 }
0x34e0   :  { %3748 = vmatpush3.bf16.msra.mxu0 %v4597_v4 }
0x34e1   :  { %3755 = vmatprep.subr.bf16.mxu0 %v4145_v0 }
0x35ae   :  { %v2538_v3 = vpop.f32.mrb[22].mxu0 }
0x35af   :  { %v2543_v6 = vrot.slane %v2538_v3, 2  ;;  %v3545_v8 = vpop.f32.mrb[23].mxu0 }
0x35b1   :  { %v2545_v14 = vadd.f32 %v2543_v6, %v4627_v11 }
0x35b3   :  { %3933 = vtanh.f32 %v2545_v14  ;;  %v3148_v18 = vmul.f32 -1.442695, %v2545_v14 }
0x35b5   :  { %3935 = vpow2.f32 %v3148_v18 }
0x35bd   :  { %v3934_v17 = vpop.eup %3933 }
0x35be   :  { %2558 = vrot.lane.b32.xlu0 %v3934_v17, %s4148_s7 }
0x35bf   :  { %v3936_v19 = vpop.eup %3935 }
0x35c0   :  { %v2549_v20 = vadd.f32 1.0, %v3936_v19 }
0x35c2   :  { %3937 = vrcp.f32 %v2549_v20 }
0x35cc   :  { %v3938_v21 = vpop.eup %3937 }
0x35cd   :  { %v2556_v25 = vmul.f32 %v3938_v21, %v2554_v24 }
0x3630   :  { %v2559_v22 = vpop.permute.xlu0 %2558 }
0x3631   :  { %v2561_v23 = vmul.f32 %v3938_v21, %v2559_v22 }
0x3633   :  { %2563 = vrot.lane.b32.xlu1 %v2561_v23, %s4149_s3 }
0x36a5   :  { %v2564_v26 = vpop.permute.xlu1 %2563 }
0x36a6   :  { %v2566_v27 = vadd.f32 %v2564_v26, %v2556_v25 }
0x36a8   :  { %3939 = vtanh.f32 %v2566_v27  ;;  %v2658_v42 = vrot.slane %v2566_v27, 6 }
0x36b2   :  { %v3940_v11 = vpop.eup %3939 }
0x36b3   :  { %2569 = vrot.lane.b32.xlu0 %v3940_v11, %s4148_s7 }
0x3725   :  { %v2570_v28 = vpop.permute.xlu0 %2569 }
0x3726   :  { %v2572_v16 = vmul.f32 %v3938_v21, %v2570_v28 }
0x3728   :  { %v2574_v29 = vrot.slane %v2572_v16, 6 }
0x372a   :  { %2575 = vrot.lane.b32.xlu1 %v2574_v29, %s4149_s3 }
0x379c   :  { %v2576_v30 = vpop.permute.xlu1 %2575 }
0x379d   :  { %3555 = vmatmul.mubr.msk.f32.vlgmr.msra.gmra.mrb[22].mxu1 %vm218_vm3, %v2576_v30 }
0x379e   :  { %3751 = vmatpush3.bf16.msra.mxu1 %v4594_v54  ;;  %3576 = vmatprep.mubr.msk.f32.mxu1 %vm4146_vm0, %v4147_v1 }
0x379f   :  { %3752 = vmatprep.subr.bf16.mxu1 %v4145_v0 }
0x37a2   :  { %3754 = vmatpush3.bf16.msra.mxu1 %v4597_v4 }
0x37a3   :  { %3761 = vmatprep.subr.bf16.mxu1 %v4145_v0 }
0x3870   :  { %v2645_v32 = vpop.f32.mrb[22].mxu1 }
0x3871   :  { %v2649_v33 = vadd.f32 %v2645_v32, %v4625_v7  ;;  %v3556_v34 = vpop.f32.mrb[23].mxu1 }
0x3873   :  { %3941 = vtanh.f32 %v2649_v33  ;;  %v3150_v36 = vmul.f32 -1.442695, %v2649_v33 }
0x3875   :  { %3943 = vpow2.f32 %v3150_v36 }
0x387d   :  { %v3942_v35 = vpop.eup %3941 }
0x387e   :  { %2662 = vrot.lane.b32.xlu0 %v3942_v35, %s4148_s7 }
0x387f   :  { %v3944_v37 = vpop.eup %3943 }
0x3880   :  { %v2653_v38 = vadd.f32 1.0, %v3944_v37 }
0x3882   :  { %3945 = vrcp.f32 %v2653_v38 }
0x388c   :  { %v3946_v39 = vpop.eup %3945 }
0x388d   :  { %v2660_v43 = vmul.f32 %v3946_v39, %v2658_v42 }
0x38f0   :  { %v2663_v40 = vpop.permute.xlu0 %2662 }
0x38f1   :  { %v2665_v41 = vmul.f32 %v3946_v39, %v2663_v40 }
0x38f3   :  { %2667 = vrot.lane.b32.xlu1 %v2665_v41, %s4149_s3 }
0x3965   :  { %v2668_v12 = vpop.permute.xlu1 %2667 }
0x3966   :  { %v2670_v44 = vadd.f32 %v2668_v12, %v2660_v43  ;;  %v2998_v43 = vld [vmem:[#allocation12 + $0x8] sm:$0xff]  ;;  %v2999_v12 = vld [vmem:[#allocation12 + $0x10] sm:$0xff] }
0x3968   :  { %3947 = vtanh.f32 %v2670_v44 }
0x3972   :  { %v3948_v13 = vpop.eup %3947 }
0x3973   :  { %2673 = vrot.lane.b32.xlu0 %v3948_v13, %s4148_s7  ;;  %v3000_v13 = vld [vmem:[#allocation12 + $0x18] sm:$0xff] }
0x39e5   :  { %v2674_v45 = vpop.permute.xlu0 %2673 }
0x39e6   :  { %v2676_v46 = vmul.f32 %v3946_v39, %v2674_v45  ;;  %v3765_v45 = vpack.c.bf16 %v3000_v13, %v2999_v12 }
0x39e8   :  { %2678 = vrot.lane.b32.xlu1 %v2676_v46, %s4149_s3 }
0x3a5a   :  { %v2679_v47 = vpop.permute.xlu1 %2678 }
0x3a5b   :  { %3566 = vmatmul.mubr.msk.f32.vlgmr.msra.gmra.mrb[24].mxu0 %vm218_vm3, %v2679_v47 }
0x3a5c   :  { %3757 = vmatpush3.bf16.msra.mxu0 %v4594_v54  ;;  %3587 = vmatprep.mubr.msk.f32.mxu0 %vm4146_vm0, %v4147_v1 }
0x3a5d   :  { %3758 = vmatprep.subr.bf16.mxu0 %v4145_v0 }
0x3a60   :  { %3760 = vmatpush3.bf16.msra.mxu0 %v4597_v4  ;;  %v2764_v4 = vrot.slane %v2670_v44, 6 }
0x3b2e   :  { %v2748_v49 = vpop.f32.mrb[24].mxu0 }
0x3b2f   :  { %v2753_v50 = vrot.slane %v2748_v49, 6  ;;  %v3567_v48 = vpop.f32.mrb[25].mxu0 }
0x3b31   :  { %v2755_v15 = vadd.f32 %v2753_v50, %v4625_v7 }
0x3b33   :  { %3949 = vtanh.f32 %v2755_v15  ;;  %v3152_v31 = vmul.f32 -1.442695, %v2755_v15  ;;  %v3157_v15 = vld [vmem:[%s4735_s11] ss:$0 sm:$0xff] }
0x3b35   :  { %3951 = vpow2.f32 %v3152_v31 }
0x3b3d   :  { %v3950_v51 = vpop.eup %3949 }
0x3b3e   :  { %2768 = vrot.lane.b32.xlu0 %v3950_v51, %s4148_s7 }
0x3b3f   :  { %v3952_v52 = vpop.eup %3951 }
0x3b40   :  { %v2759_v54 = vadd.f32 1.0, %v3952_v52 }
0x3b42   :  { %3953 = vrcp.f32 %v2759_v54 }
0x3b4c   :  { %v3954_v53 = vpop.eup %3953 }
0x3b4d   :  { %v2766_v56 = vmul.f32 %v3954_v53, %v2764_v4 }
0x3bb0   :  { %v2769_v55 = vpop.permute.xlu0 %2768 }
0x3bb1   :  { %v2771_v9 = vmul.f32 %v3954_v53, %v2769_v55 }
0x3bb3   :  { %2773 = vrot.lane.b32.xlu1 %v2771_v9, %s4149_s3 }
0x3c25   :  { %v2774_v57 = vpop.permute.xlu1 %2773 }
0x3c26   :  { %v2776_v58 = vadd.f32 %v2774_v57, %v2766_v56 }
0x3c28   :  { %3955 = vtanh.f32 %v2776_v58 }
0x3c32   :  { %v3956_v5 = vpop.eup %3955 }
0x3c33   :  { %2779 = vrot.lane.b32.xlu0 %v3956_v5, %s4148_s7 }
0x3ca5   :  { %v2780_v60 = vpop.permute.xlu0 %2779 }
0x3ca6   :  { %v2782_v59 = vmul.f32 %v3954_v53, %v2780_v60 }
0x3ca8   :  { %v2784_v61 = vrot.slane %v2782_v59, 2 }
0x3caa   :  { %2785 = vrot.lane.b32.xlu1 %v2784_v61, %s4149_s3 }
0x3d1c   :  { %v2786_v62 = vpop.permute.xlu1 %2785 }
0x3d1d   :  { %3577 = vmatmul.mubr.msk.f32.vlgmr.msra.gmra.mrb[24].mxu1 %vm218_vm3, %v2786_v62 }
0x3d1e   :  { %3598 = vmatprep.mubr.msk.f32.mxu1 %vm4146_vm0, %v4147_v1  ;;  %v2871_v1 = vrot.slane %v2776_v58, 6 }
0x3df0   :  { %v2855_v10 = vpop.f32.mrb[24].mxu1 }
0x3df1   :  { %v2860_v63 = vrot.slane %v2855_v10, 4  ;;  %v3578_v2 = vpop.f32.mrb[25].mxu1 }
0x3df3   :  { %v2862_v3 = vadd.f32 %v2860_v63, %v4625_v7 }
0x3df5   :  { %3957 = vtanh.f32 %v2862_v3  ;;  %v3154_v8 = vmul.f32 -1.442695, %v2862_v3 }
0x3df7   :  { %3959 = vpow2.f32 %v3154_v8 }
0x3dff   :  { %v3958_v6 = vpop.eup %3957 }
0x3e00   :  { %2875 = vrot.lane.b32.xlu0 %v3958_v6, %s4148_s7 }
0x3e01   :  { %v3960_v14 = vpop.eup %3959 }
0x3e02   :  { %v2866_v17 = vadd.f32 1.0, %v3960_v14 }
0x3e04   :  { %3961 = vrcp.f32 %v2866_v17 }
0x3e0e   :  { %v3962_v18 = vpop.eup %3961 }
0x3e0f   :  { %v2873_v21 = vmul.f32 %v3962_v18, %v2871_v1 }
0x3e72   :  { %v2876_v19 = vpop.permute.xlu0 %2875 }
0x3e73   :  { %v2878_v20 = vmul.f32 %v3962_v18, %v2876_v19 }
0x3e75   :  { %2880 = vrot.lane.b32.xlu1 %v2878_v20, %s4149_s3 }
0x3ee7   :  { %v2881_v22 = vpop.permute.xlu1 %2880 }
0x3ee8   :  { %v2883_v23 = vadd.f32 %v2881_v22, %v2873_v21 }
0x3eea   :  { %3963 = vtanh.f32 %v2883_v23  ;;  %v2978_v39 = vrot.slane %v2883_v23, 6 }
0x3ef4   :  { %v3964_v24 = vpop.eup %3963 }
0x3ef5   :  { %2886 = vrot.lane.b32.xlu0 %v3964_v24, %s4148_s7 }
0x3f67   :  { %v2887_v25 = vpop.permute.xlu0 %2886 }
0x3f68   :  { %v2889_v26 = vmul.f32 %v3962_v18, %v2887_v25 }
0x3f6a   :  { %v2891_v27 = vrot.slane %v2889_v26, 4 }
0x3f6c   :  { %2892 = vrot.lane.b32.xlu1 %v2891_v27, %s4149_s3 }
0x3fde   :  { %v2893_v11 = vpop.permute.xlu1 %2892 }
0x3fdf   :  { %3588 = vmatmul.mubr.msk.f32.vlgmr.msra.gmra.mrb[26].mxu0 %vm218_vm3, %v2893_v11 }
0x40b2   :  { %v2962_v28 = vpop.f32.mrb[26].mxu0 }
0x40b3   :  { %v2967_v16 = vrot.slane %v2962_v28, 2  ;;  %v3589_v29 = vpop.f32.mrb[27].mxu0 }
0x40b5   :  { %v2969_v30 = vadd.f32 %v2967_v16, %v4625_v7  ;;  %v2997_v7 = vld [vmem:[#allocation12] sm:$0xff] }
0x40b6   :  { %v3762_v44 = vpack.c.bf16 %v2998_v43, %v2997_v7 }
0x40b7   :  { %3965 = vtanh.f32 %v2969_v30  ;;  %v3156_v33 = vmul.f32 -1.442695, %v2969_v30 }
0x40b8   :  { %3763 = vmatpush3.bf16.msra.mxu1 %v3762_v44 }
0x40b9   :  { %3967 = vpow2.f32 %v3156_v33  ;;  %3764 = vmatprep.subr.bf16.mxu1 %v4145_v0 }
0x40bc   :  { %3766 = vmatpush3.bf16.msra.mxu1 %v3765_v45 }
0x40c1   :  { %v3966_v32 = vpop.eup %3965 }
0x40c2   :  { %2982 = vrot.lane.b32.xlu0 %v3966_v32, %s4148_s7 }
0x40c3   :  { %v3968_v34 = vpop.eup %3967 }
0x40c4   :  { %v2973_v35 = vadd.f32 1.0, %v3968_v34 }
0x40c6   :  { %3969 = vrcp.f32 %v2973_v35 }
0x40d0   :  { %v3970_v36 = vpop.eup %3969 }
0x40d1   :  { %v2980_v40 = vmul.f32 %v3970_v36, %v2978_v39 }
0x4134   :  { %v2983_v37 = vpop.permute.xlu0 %2982 }
0x4135   :  { %v2985_v38 = vmul.f32 %v3970_v36, %v2983_v37 }
0x4137   :  { %2987 = vrot.lane.b32.xlu1 %v2985_v38, %s4149_s3 }
0x41a9   :  { %v2988_v41 = vpop.permute.xlu1 %2987 }
0x41aa   :  { %v2990_v42 = vadd.f32 %v2988_v41, %v2980_v40 }
0x41ac   :  { %3971 = vtanh.f32 %v2990_v42 }
0x41b6   :  { %v3972_v46 = vpop.eup %3971 }
0x41b7   :  { %2993 = vrot.lane.b32.xlu0 %v3972_v46, %s4148_s7 }
0x4229   :  { %v2994_v47 = vpop.permute.xlu0 %2993 }
0x422a   :  { %v2996_v49 = vmul.f32 %v3970_v36, %v2994_v47 }
0x422c   :  { %v3009_v50 = vrot.slane %v2996_v49, 6 }
0x422e   :  { %3010 = vrot.lane.b32.xlu1 %v3009_v50, %s4149_s3 }
0x42a0   :  { %v3011_v48 = vpop.permute.xlu1 %3010 }
0x42a1   :  { %3599 = vmatmul.mubr.msk.f32.vlgmr.msra.gmra.mrb[26].mxu1 %vm218_vm3, %v3011_v48 }
0x4374   :  { %v3080_v51 = vpop.f32.mrb[26].mxu1 }
0x4375   :  { %v3081_v0 = vadd.f32 %v3157_v15, %v3080_v51  ;;  %v3600_v31 = vpop.f32.mrb[27].mxu1 }
0x4377   :  { %3084 = vst [vmem:[#allocation14] sm:$0x3] %v3081_v0 }
0x4378   :  { %4116 = shalt.err (!%p4113_p10)
}
0x4379   :  { %s4117_s8 = scalar_lea.hbm %s4736_s12, 32 }
0x437a   :  { %p4118_p11 = scmp.ne.s32.totalorder %s4736_s12, %s4117_s8  ;;  %p4121_p12 = scmp.lt.u32.totalorder %s4117_s8, %s4736_s12 }
0x437c   :  { %p4123_p13 = pnand %p4121_p12, %p4118_p11 }
0x437e   :  { %4126 = shalt.err (!%p4123_p13)
}
0x437f   :  { %3094 = dma.vmem_to_hbm [thread:$0]  %s3092_s1, 32, %s4736_s12, [#allocation5]  }
0x4380   :  { %4135 = dma.done.wait [#allocation5], 32  }
0x4381   :  { %4136 = vsyncadd [#allocation5], 4294967264 }
0x4382   :  { %3098 = vsyncpa [#allocation4], 1 }
0x4383   :  { %3099 = vsyncpa [#allocation7], 1 }
0x4384   :  { %3100 = vsyncpa [#allocation10], 1 }
0x4385   :  { %3101 = vsyncpa [#allocation13], 1 }
0x4386   :  { %3102 = vsyncpa [#allocation5], 1 }

</bundles_post_ra>
